<compile_context>
chip_gen: v7x
topology: tpu7x:2x2x1
jax: 0.10.0
libtpu: 0.0.40
codegen_flags: <defaults>
</compile_context>

<pallas_src>
import functools

import jax
import jax.numpy as jnp
from jax.experimental import pallas as pl
from jax.experimental.pallas import tpu as pltpu


def _round_up(x, m):
    return (x + m - 1) // m * m


# ----------------------------------------------------------------------------
# Fused GCN layer kernel:
#   O = [relu]( diag(dis) @ A_hat @ diag(dis) @ (X @ W) + b )
# grid = (row blocks [parallel], contraction blocks [arbitrary, last])
# ----------------------------------------------------------------------------
def _gcn_layer_kernel(a_ref, x_ref, w_ref, dcol_ref, drow_ref, b_ref, o_ref,
                      *scratch, apply_relu, tk):
    # bf16 output -> dedicated f32 scratch accumulator; f32 output ->
    # accumulate directly into the resident output block (its block index is
    # constant across k, so it stays in VMEM for the whole reduction).
    acc_ref = scratch[0] if scratch else o_ref
    k = pl.program_id(1)

    @pl.when(k == 0)
    def _():
        acc_ref[...] = jnp.zeros_like(acc_ref)

    # Fused projection of this contraction slice of the VMEM-resident X.
    # Fold the D^-1/2 column scale into XW so the big (tm, tk) A block never
    # needs any VPU rescaling.
    start = pl.multiple_of(k * tk, tk)
    xw = jnp.dot(x_ref[pl.ds(start, tk), :], w_ref[...],
                 preferred_element_type=jnp.float32)
    xw = (dcol_ref[...] * xw).astype(jnp.bfloat16)
    acc_ref[...] += jnp.dot(a_ref[...], xw, preferred_element_type=jnp.float32)

    @pl.when(k == pl.num_programs(1) - 1)
    def _():
        # D^-1/2 row scale, bias, optional ReLU.  Padded rows pick up the bias,
        # but their deg_inv_sqrt is 0, so the next layer's column scaling
        # annihilates them and the wrapper slices padding off the final output.
        out = drow_ref[...] * acc_ref[...] + b_ref[...]
        if apply_relu:
            out = jnp.maximum(out, 0.0)
        o_ref[...] = out.astype(o_ref.dtype)


def _vmem_limit_bytes(tm, tk, n_pad, c, h, out_itemsize, use_scratch):
    """Scoped-VMEM request: 2x headroom over the double-buffered working set,
    floored at the 32 MiB default and capped below physical capacity
    (v7x = 64 MiB, v5e/v6e = 128 MiB)."""
    a_blk = tm * tk * 2                      # bf16 A_hat tile
    x_res = n_pad * c * 2                    # resident X
    out_blk = tm * h * out_itemsize
    misc = (tk + tm + h) * 4                 # dis slices + bias
    est = 2 * (a_blk + x_res + out_blk + misc) + tk * h * 4
    if use_scratch:
        est += tm * h * 4
    try:
        cap = int(pltpu.get_tpu_info().vmem_capacity_bytes * 3 // 4)
    except Exception:
        cap = 48 * 1024 * 1024               # conservative (fits v7x's 64 MiB)
    return int(min(cap, max(32 * 1024 * 1024, 2 * est)))


def gcn_layer(a_hat, x, w, dis, b, *, tm, tk, apply_relu, out_dtype):
    n_pad, c = x.shape
    h = w.shape[1]
    use_scratch = jnp.dtype(out_dtype) != jnp.dtype(jnp.float32)
    kernel = functools.partial(_gcn_layer_kernel, apply_relu=apply_relu, tk=tk)
    scratch = [pltpu.VMEM((tm, h), jnp.float32)] if use_scratch else []
    vmem_limit = _vmem_limit_bytes(tm, tk, n_pad, c, h,
                                   jnp.dtype(out_dtype).itemsize, use_scratch)
    return pl.pallas_call(
        kernel,
        out_shape=jax.ShapeDtypeStruct((n_pad, h), out_dtype),
        grid_spec=pltpu.PrefetchScalarGridSpec(
            num_scalar_prefetch=0,
            grid=(n_pad // tm, n_pad // tk),
            in_specs=[
                pl.BlockSpec((tm, tk), lambda i, k: (i, k)),     # A_hat tile
                pl.BlockSpec((n_pad, c), lambda i, k: (0, 0)),   # X, VMEM-resident
                pl.BlockSpec((c, h), lambda i, k: (0, 0)),       # W, resident
                pl.BlockSpec((tk, 1), lambda i, k: (k, 0)),      # D^-1/2 (cols)
                pl.BlockSpec((tm, 1), lambda i, k: (i, 0)),      # D^-1/2 (rows)
                pl.BlockSpec((1, h), lambda i, k: (0, 0)),       # bias
            ],
            out_specs=pl.BlockSpec((tm, h), lambda i, k: (i, 0)),
            scratch_shapes=scratch,
        ),
        compiler_params=pltpu.CompilerParams(
            dimension_semantics=("parallel", "arbitrary"),
            vmem_limit_bytes=vmem_limit,
        ),
    )(a_hat, x, w, dis, dis, b)


# ----------------------------------------------------------------------------
# Tiling policy
# ----------------------------------------------------------------------------
def _choose_tiles(n, tile):
    """Pick (tm, tk, n_pad).

    Small graphs: single contraction step (tk = n_pad) and 4 row blocks so the
    'parallel' axis feeds both v7x TensorCores; tm is a multiple of 16/64.
    Large graphs: tm = tk = tile (>=512 recovers ~85% of HBM roofline); if the
    row-block count comes out odd, halve tm (no extra padding) to keep it even.
    """
    tile = max(256, tile // 256 * 256)
    if n <= tile:
        n_pad = _round_up(n, 256)
        tm = max(64, n_pad // 4)
        tk = n_pad
    else:
        tm = tk = tile
        n_pad = _round_up(n, tile)
        if (n_pad // tm) % 2:
            tm = tile // 2
    return tm, tk, n_pad


# ----------------------------------------------------------------------------
# Adjacency prep: single bf16 O(N^2) materialization; normalization in-kernel.
# ----------------------------------------------------------------------------
def build_adjacency(edge_index, num_nodes, num_nodes_pad):
    """Raw A_hat = A + I in bf16 (PyG source->target: A_hat[dst, src] += 1) and
    the f32 deg^-1/2 vector (shape (N_pad, 1), zero on padded rows)."""
    # TODO(synk): for large sparse graphs, replace the dense A_hat with a
    # block-sparse layout + scalar-prefetched block offsets.
    src, dst = edge_index[0], edge_index[1]
    loop = jnp.arange(num_nodes, dtype=edge_index.dtype)
    src = jnp.concatenate([src, loop])
    dst = jnp.concatenate([dst, loop])
    ones = jnp.ones(src.shape[0], dtype=jnp.float32)
    a_hat = (jnp.zeros((num_nodes_pad, num_nodes_pad), dtype=jnp.bfloat16)
             .at[dst, src].add(ones.astype(jnp.bfloat16)))
    deg = jnp.zeros((num_nodes_pad,), dtype=jnp.float32).at[dst].add(ones)
    dis = jnp.where(deg > 0, jax.lax.rsqrt(jnp.maximum(deg, 1.0)), 0.0)
    return a_hat, dis.reshape(num_nodes_pad, 1)


def init_params(key, in_channels, out_channels):
    """Deterministic synthetic parameters matching GCNEncoder's shapes."""
    hidden = 2 * out_channels
    k1, k2, k3, k4 = jax.random.split(key, 4)
    w1 = (jax.random.normal(k1, (in_channels, hidden), jnp.float32)
          * (1.0 / (in_channels ** 0.5)))
    b1 = 0.1 * jax.random.normal(k2, (1, hidden), jnp.float32)
    w2 = (jax.random.normal(k3, (hidden, out_channels), jnp.float32)
          * (1.0 / (hidden ** 0.5)))
    b2 = 0.1 * jax.random.normal(k4, (1, out_channels), jnp.float32)
    return w1, b1, w2, b2


# ----------------------------------------------------------------------------
# Forward pass of GCNEncoder.
# ----------------------------------------------------------------------------
def gcn_encoder(x, edge_index, params, *, tile=1024):
    w1, b1, w2, b2 = params
    n, c = x.shape
    hidden = w1.shape[1]
    out_ch = w2.shape[1]

    hp = _round_up(hidden, 128)   # lane-dense channel dims (MXU + unmasked vst)
    op = _round_up(out_ch, 128)

    tm, tk, n_pad = _choose_tiles(n, tile)

    # zero-padded bf16 MXU operands; biases stay f32
    xp = jnp.zeros((n_pad, c), jnp.bfloat16).at[:n, :].set(x.astype(jnp.bfloat16))
    w1p = (jnp.zeros((c, hp), jnp.bfloat16)
           .at[:, :hidden].set(w1.astype(jnp.bfloat16)))
    b1p = jnp.zeros((1, hp), jnp.float32).at[:, :hidden].set(b1)
    w2p = (jnp.zeros((hp, op), jnp.bfloat16)
           .at[:hidden, :out_ch].set(w2.astype(jnp.bfloat16)))
    b2p = jnp.zeros((1, op), jnp.float32).at[:, :out_ch].set(b2)

    a_hat, dis = build_adjacency(edge_index, n, n_pad)

    # layer 1: H = relu(D^-1/2 A_hat D^-1/2 (X @ W1) + b1)   (bf16 out, scratch acc)
    h = gcn_layer(a_hat, xp, w1p, dis, b1p, tm=tm, tk=tk,
                  apply_relu=True, out_dtype=jnp.bfloat16)
    # layer 2: Z = D^-1/2 A_hat D^-1/2 (H @ W2) + b2         (f32 out, in-place acc)
    z = gcn_layer(a_hat, h, w2p, dis, b2p, tm=tm, tk=tk,
                  apply_relu=False, out_dtype=jnp.float32)

    return z[:n, :out_ch]


# ----------------------------------------------------------------------------
# Pure-JAX f32 reference (test only).
# ----------------------------------------------------------------------------
def _reference_norm_adj(edge_index, num_nodes):
    src, dst = edge_index[0], edge_index[1]
    loop = jnp.arange(num_nodes, dtype=edge_index.dtype)
    src = jnp.concatenate([src, loop])
    dst = jnp.concatenate([dst, loop])
    w = jnp.ones(src.shape[0], jnp.float32)
    a_hat = jnp.zeros((num_nodes, num_nodes), jnp.float32).at[dst, src].add(w)
    deg = jnp.zeros((num_nodes,), jnp.float32).at[dst].add(w)
    dis = jnp.where(deg > 0, 1.0 / jnp.sqrt(deg), 0.0)
    return dis[:, None] * a_hat * dis[None, :]


if __name__ == "__main__":
    key = jax.random.PRNGKey(0)
    kx, kp = jax.random.split(key)

    num_nodes = 384          # padded to 512 -> 4 row blocks x 1 contraction step
    in_channels = 8
    out_channels = 4

    x = jax.random.normal(kx, (num_nodes, in_channels), dtype=jnp.float32)

    # undirected ring graph as edge_index (2, E)
    idx = jnp.arange(num_nodes, dtype=jnp.int32)
    nxt = (idx + 1) % num_nodes
    edge_index = jnp.stack(
        [jnp.concatenate([idx, nxt]), jnp.concatenate([nxt, idx])], axis=0
    )

    params = init_params(kp, in_channels, out_channels)

    fwd = jax.jit(functools.partial(gcn_encoder, tile=1024))
    out = fwd(x, edge_index, params)
    jax.block_until_ready(out)

    # pure-JAX f32 reference (tolerance absorbs bf16 MXU operand rounding)
    w1, b1, w2, b2 = params
    a_ref = _reference_norm_adj(edge_index, num_nodes)
    h_ref = jnp.maximum(a_ref @ (x @ w1) + b1, 0.0)
    z_ref = a_ref @ (h_ref @ w2) + b2
    assert out.shape == z_ref.shape
    max_err = float(jnp.max(jnp.abs(out - z_ref)))
    assert jnp.allclose(out, z_ref, atol=5e-2, rtol=5e-2), max_err

    print("KERNEL_OK")
</pallas_src>

<mosaic_0001>
module attributes {stable_mosaic.version = 11 : i64} {
  func.func private @main(%arg0: i32) attributes {dimension_semantics = [#tpu.dimension_semantics<core_parallel>], iteration_bounds = array<i64: 2>, tpu.core_type = #tpu.core_type<sc_scalar_subcore>, window_params = []} {
    return
  }
}

module attributes {stable_mosaic.version = 11 : i64} {
  func.func private @main(%arg0: i32) attributes {dimension_semantics = [#tpu.dimension_semantics<core_parallel>], iteration_bounds = array<i64: 2>, tpu.core_type = #tpu.core_type<sc_scalar_subcore>, window_params = []} {
    return
  }
}

module attributes {stable_mosaic.version = 11 : i64} {
  func.func @_gcn_layer_kernel(%arg0: i32, %arg1: i32, %arg2: memref<128x512xbf16, #tpu.memory_space<vmem>>, %arg3: memref<512x8xbf16, #tpu.memory_space<vmem>>, %arg4: memref<8x128xbf16, #tpu.memory_space<vmem>>, %arg5: memref<512x1xf32, #tpu.memory_space<vmem>>, %arg6: memref<128x1xf32, #tpu.memory_space<vmem>>, %arg7: memref<1x128xf32, #tpu.memory_space<vmem>>, %arg8: memref<128x128xbf16, #tpu.memory_space<vmem>>, %arg9: memref<128x128xf32, #tpu.memory_space<vmem>>) attributes {dimension_semantics = [#tpu.dimension_semantics<parallel>, #tpu.dimension_semantics<arbitrary>], iteration_bounds = array<i64: 4, 1>, scalar_prefetch = 0 : i64, scratch_operands = 1 : i64, tpu.core_type = #tpu.core_type<tc>, window_params = [{transform_indices = @transform_0, window_bounds = array<i64: 128, 512>}, {pipeline_mode = #tpu.pipeline_mode<synchronous>, transform_indices = @transform_1, window_bounds = array<i64: 512, 8>}, {pipeline_mode = #tpu.pipeline_mode<synchronous>, transform_indices = @transform_2, window_bounds = array<i64: 8, 128>}, {transform_indices = @transform_3, window_bounds = array<i64: 512, 1>}, {transform_indices = @transform_4, window_bounds = array<i64: 128, 1>}, {pipeline_mode = #tpu.pipeline_mode<synchronous>, transform_indices = @transform_5, window_bounds = array<i64: 1, 128>}, {transform_indices = @transform_6, window_bounds = array<i64: 128, 128>}]} {
    %c0_i32 = arith.constant 0 : i32
    %0 = arith.cmpi eq, %arg1, %c0_i32 : i32
    %1 = arith.extui %0 : i1 to i32
    %c0_i32_0 = arith.constant 0 : i32
    %2 = arith.cmpi ne, %1, %c0_i32_0 : i32
    scf.if %2 {
      %cst_14 = arith.constant 0.000000e+00 : f32
      %21 = vector.broadcast %cst_14 : f32 to vector<128x128xf32>
      %c0_15 = arith.constant 0 : index
      %c0_16 = arith.constant 0 : index
      %22 = vector.load %arg9[%c0_15, %c0_16] : memref<128x128xf32, #tpu.memory_space<vmem>>, vector<128x128xf32>
      tpu.vector_store %arg9[%c0_15, %c0_16], %21 {strides = array<i32>} : memref<128x128xf32, #tpu.memory_space<vmem>>, vector<128x128xf32>,
    } else {
    }
    %c512_i32 = arith.constant 512 : i32
    %3 = arith.muli %arg1, %c512_i32 : i32
    %4 = tpu.assume_multiple %3, 512 : i32
    %5 = arith.index_cast %4 : i32 to index
    %c0 = arith.constant 0 : index
    %6 = vector.load %arg3[%5, %c0] : memref<512x8xbf16, #tpu.memory_space<vmem>>, vector<512x8xbf16>
    %c0_1 = arith.constant 0 : index
    %c0_2 = arith.constant 0 : index
    %7 = vector.load %arg4[%c0_1, %c0_2] : memref<8x128xbf16, #tpu.memory_space<vmem>>, vector<8x128xbf16>
    %cst = arith.constant dense<0.000000e+00> : vector<512x128xf32>
    %8 = tpu.matmul %6, %7, %cst {dimension_numbers = #tpu.dot_dimension_numbers<[1], [0], [0], [1], [0, 0, 1, 1], [], []>} : vector<512x8xbf16>, vector<8x128xbf16>, vector<512x128xf32> -> vector<512x128xf32>
    %c0_3 = arith.constant 0 : index
    %c0_4 = arith.constant 0 : index
    %9 = vector.load %arg5[%c0_3, %c0_4] : memref<512x1xf32, #tpu.memory_space<vmem>>, vector<512x1xf32>
    %10 = vector.broadcast %9 : vector<512x1xf32> to vector<512x128xf32>
    %11 = arith.mulf %10, %8 : vector<512x128xf32>
    %12 = arith.truncf %11 : vector<512x128xf32> to vector<512x128xbf16>
    %c0_5 = arith.constant 0 : index
    %c0_6 = arith.constant 0 : index
    %13 = vector.load %arg9[%c0_5, %c0_6] : memref<128x128xf32, #tpu.memory_space<vmem>>, vector<128x128xf32>
    %c0_7 = arith.constant 0 : index
    %c0_8 = arith.constant 0 : index
    %14 = vector.load %arg2[%c0_7, %c0_8] : memref<128x512xbf16, #tpu.memory_space<vmem>>, vector<128x512xbf16>
    %cst_9 = arith.constant dense<0.000000e+00> : vector<128x128xf32>
    %15 = tpu.matmul %14, %12, %cst_9 {dimension_numbers = #tpu.dot_dimension_numbers<[1], [0], [0], [1], [0, 0, 1, 1], [], []>} : vector<128x512xbf16>, vector<512x128xbf16>, vector<128x128xf32> -> vector<128x128xf32>
    %16 = arith.addf %13, %15 : vector<128x128xf32>
    %c0_10 = arith.constant 0 : index
    %c0_11 = arith.constant 0 : index
    %17 = vector.load %arg9[%c0_10, %c0_11] : memref<128x128xf32, #tpu.memory_space<vmem>>, vector<128x128xf32>
    tpu.vector_store %arg9[%c0_10, %c0_11], %16 {strides = array<i32>} : memref<128x128xf32, #tpu.memory_space<vmem>>, vector<128x128xf32>,
    %c0_i32_12 = arith.constant 0 : i32
    %18 = arith.cmpi eq, %arg1, %c0_i32_12 : i32
    %19 = arith.extui %18 : i1 to i32
    %c0_i32_13 = arith.constant 0 : i32
    %20 = arith.cmpi ne, %19, %c0_i32_13 : i32
    scf.if %20 {
      %c0_14 = arith.constant 0 : index
      %c0_15 = arith.constant 0 : index
      %21 = vector.load %arg6[%c0_14, %c0_15] : memref<128x1xf32, #tpu.memory_space<vmem>>, vector<128x1xf32>
      %c0_16 = arith.constant 0 : index
      %c0_17 = arith.constant 0 : index
      %22 = vector.load %arg9[%c0_16, %c0_17] : memref<128x128xf32, #tpu.memory_space<vmem>>, vector<128x128xf32>
      %23 = vector.broadcast %21 : vector<128x1xf32> to vector<128x128xf32>
      %24 = arith.mulf %23, %22 : vector<128x128xf32>
      %c0_18 = arith.constant 0 : index
      %c0_19 = arith.constant 0 : index
      %25 = vector.load %arg7[%c0_18, %c0_19] : memref<1x128xf32, #tpu.memory_space<vmem>>, vector<1x128xf32>
      %26 = vector.broadcast %25 : vector<1x128xf32> to vector<128x128xf32>
      %27 = arith.addf %24, %26 : vector<128x128xf32>
      %cst_20 = arith.constant 0.000000e+00 : f32
      %28 = vector.broadcast %cst_20 : f32 to vector<128x128xf32>
      %29 = arith.maximumf %27, %28 : vector<128x128xf32>
      %30 = arith.truncf %29 : vector<128x128xf32> to vector<128x128xbf16>
      %c0_21 = arith.constant 0 : index
      %c0_22 = arith.constant 0 : index
      %31 = vector.load %arg8[%c0_21, %c0_22] : memref<128x128xbf16, #tpu.memory_space<vmem>>, vector<128x128xbf16>
      tpu.vector_store %arg8[%c0_21, %c0_22], %30 {strides = array<i32>} : memref<128x128xbf16, #tpu.memory_space<vmem>>, vector<128x128xbf16>,
    } else {
    }
    return
  }
  func.func @transform_0(%arg0: i32, %arg1: i32) -> (i32, i32) {
    %c0_i32 = arith.constant 0 : i32
    return %arg0, %arg1 : i32, i32
  }
  func.func @transform_1(%arg0: i32, %arg1: i32) -> (i32, i32) {
    %c0_i32 = arith.constant 0 : i32
    %c0_i32_0 = arith.constant 0 : i32
    %c0_i32_1 = arith.constant 0 : i32
    return %c0_i32, %c0_i32_0 : i32, i32
  }
  func.func @transform_2(%arg0: i32, %arg1: i32) -> (i32, i32) {
    %c0_i32 = arith.constant 0 : i32
    %c0_i32_0 = arith.constant 0 : i32
    %c0_i32_1 = arith.constant 0 : i32
    return %c0_i32, %c0_i32_0 : i32, i32
  }
  func.func @transform_3(%arg0: i32, %arg1: i32) -> (i32, i32) {
    %c0_i32 = arith.constant 0 : i32
    %c0_i32_0 = arith.constant 0 : i32
    return %arg1, %c0_i32 : i32, i32
  }
  func.func @transform_4(%arg0: i32, %arg1: i32) -> (i32, i32) {
    %c0_i32 = arith.constant 0 : i32
    %c0_i32_0 = arith.constant 0 : i32
    return %arg0, %c0_i32 : i32, i32
  }
  func.func @transform_5(%arg0: i32, %arg1: i32) -> (i32, i32) {
    %c0_i32 = arith.constant 0 : i32
    %c0_i32_0 = arith.constant 0 : i32
    %c0_i32_1 = arith.constant 0 : i32
    return %c0_i32, %c0_i32_0 : i32, i32
  }
  func.func @transform_6(%arg0: i32, %arg1: i32) -> (i32, i32) {
    %c0_i32 = arith.constant 0 : i32
    %c0_i32_0 = arith.constant 0 : i32
    return %arg0, %c0_i32 : i32, i32
  }
}

module attributes {stable_mosaic.version = 11 : i64} {
  func.func @_gcn_layer_kernel(%arg0: i32, %arg1: i32, %arg2: memref<128x512xbf16, #tpu.memory_space<vmem>>, %arg3: memref<512x128xbf16, #tpu.memory_space<vmem>>, %arg4: memref<128x128xbf16, #tpu.memory_space<vmem>>, %arg5: memref<512x1xf32, #tpu.memory_space<vmem>>, %arg6: memref<128x1xf32, #tpu.memory_space<vmem>>, %arg7: memref<1x128xf32, #tpu.memory_space<vmem>>, %arg8: memref<128x128xf32, #tpu.memory_space<vmem>>) attributes {dimension_semantics = [#tpu.dimension_semantics<parallel>, #tpu.dimension_semantics<arbitrary>], iteration_bounds = array<i64: 4, 1>, scalar_prefetch = 0 : i64, scratch_operands = 0 : i64, tpu.core_type = #tpu.core_type<tc>, window_params = [{transform_indices = @transform_0, window_bounds = array<i64: 128, 512>}, {pipeline_mode = #tpu.pipeline_mode<synchronous>, transform_indices = @transform_1, window_bounds = array<i64: 512, 128>}, {pipeline_mode = #tpu.pipeline_mode<synchronous>, transform_indices = @transform_2, window_bounds = array<i64: 128, 128>}, {transform_indices = @transform_3, window_bounds = array<i64: 512, 1>}, {transform_indices = @transform_4, window_bounds = array<i64: 128, 1>}, {pipeline_mode = #tpu.pipeline_mode<synchronous>, transform_indices = @transform_5, window_bounds = array<i64: 1, 128>}, {transform_indices = @transform_6, window_bounds = array<i64: 128, 128>}]} {
    %c0_i32 = arith.constant 0 : i32
    %0 = arith.cmpi eq, %arg1, %c0_i32 : i32
    %1 = arith.extui %0 : i1 to i32
    %c0_i32_0 = arith.constant 0 : i32
    %2 = arith.cmpi ne, %1, %c0_i32_0 : i32
    scf.if %2 {
      %cst_14 = arith.constant 0.000000e+00 : f32
      %21 = vector.broadcast %cst_14 : f32 to vector<128x128xf32>
      %c0_15 = arith.constant 0 : index
      %c0_16 = arith.constant 0 : index
      %22 = vector.load %arg8[%c0_15, %c0_16] : memref<128x128xf32, #tpu.memory_space<vmem>>, vector<128x128xf32>
      tpu.vector_store %arg8[%c0_15, %c0_16], %21 {strides = array<i32>} : memref<128x128xf32, #tpu.memory_space<vmem>>, vector<128x128xf32>,
    } else {
    }
    %c512_i32 = arith.constant 512 : i32
    %3 = arith.muli %arg1, %c512_i32 : i32
    %4 = tpu.assume_multiple %3, 512 : i32
    %5 = arith.index_cast %4 : i32 to index
    %c0 = arith.constant 0 : index
    %6 = vector.load %arg3[%5, %c0] : memref<512x128xbf16, #tpu.memory_space<vmem>>, vector<512x128xbf16>
    %c0_1 = arith.constant 0 : index
    %c0_2 = arith.constant 0 : index
    %7 = vector.load %arg4[%c0_1, %c0_2] : memref<128x128xbf16, #tpu.memory_space<vmem>>, vector<128x128xbf16>
    %cst = arith.constant dense<0.000000e+00> : vector<512x128xf32>
    %8 = tpu.matmul %6, %7, %cst {dimension_numbers = #tpu.dot_dimension_numbers<[1], [0], [0], [1], [0, 0, 1, 1], [], []>} : vector<512x128xbf16>, vector<128x128xbf16>, vector<512x128xf32> -> vector<512x128xf32>
    %c0_3 = arith.constant 0 : index
    %c0_4 = arith.constant 0 : index
    %9 = vector.load %arg5[%c0_3, %c0_4] : memref<512x1xf32, #tpu.memory_space<vmem>>, vector<512x1xf32>
    %10 = vector.broadcast %9 : vector<512x1xf32> to vector<512x128xf32>
    %11 = arith.mulf %10, %8 : vector<512x128xf32>
    %12 = arith.truncf %11 : vector<512x128xf32> to vector<512x128xbf16>
    %c0_5 = arith.constant 0 : index
    %c0_6 = arith.constant 0 : index
    %13 = vector.load %arg8[%c0_5, %c0_6] : memref<128x128xf32, #tpu.memory_space<vmem>>, vector<128x128xf32>
    %c0_7 = arith.constant 0 : index
    %c0_8 = arith.constant 0 : index
    %14 = vector.load %arg2[%c0_7, %c0_8] : memref<128x512xbf16, #tpu.memory_space<vmem>>, vector<128x512xbf16>
    %cst_9 = arith.constant dense<0.000000e+00> : vector<128x128xf32>
    %15 = tpu.matmul %14, %12, %cst_9 {dimension_numbers = #tpu.dot_dimension_numbers<[1], [0], [0], [1], [0, 0, 1, 1], [], []>} : vector<128x512xbf16>, vector<512x128xbf16>, vector<128x128xf32> -> vector<128x128xf32>
    %16 = arith.addf %13, %15 : vector<128x128xf32>
    %c0_10 = arith.constant 0 : index
    %c0_11 = arith.constant 0 : index
    %17 = vector.load %arg8[%c0_10, %c0_11] : memref<128x128xf32, #tpu.memory_space<vmem>>, vector<128x128xf32>
    tpu.vector_store %arg8[%c0_10, %c0_11], %16 {strides = array<i32>} : memref<128x128xf32, #tpu.memory_space<vmem>>, vector<128x128xf32>,
    %c0_i32_12 = arith.constant 0 : i32
    %18 = arith.cmpi eq, %arg1, %c0_i32_12 : i32
    %19 = arith.extui %18 : i1 to i32
    %c0_i32_13 = arith.constant 0 : i32
    %20 = arith.cmpi ne, %19, %c0_i32_13 : i32
    scf.if %20 {
      %c0_14 = arith.constant 0 : index
      %c0_15 = arith.constant 0 : index
      %21 = vector.load %arg6[%c0_14, %c0_15] : memref<128x1xf32, #tpu.memory_space<vmem>>, vector<128x1xf32>
      %c0_16 = arith.constant 0 : index
      %c0_17 = arith.constant 0 : index
      %22 = vector.load %arg8[%c0_16, %c0_17] : memref<128x128xf32, #tpu.memory_space<vmem>>, vector<128x128xf32>
      %23 = vector.broadcast %21 : vector<128x1xf32> to vector<128x128xf32>
      %24 = arith.mulf %23, %22 : vector<128x128xf32>
      %c0_18 = arith.constant 0 : index
      %c0_19 = arith.constant 0 : index
      %25 = vector.load %arg7[%c0_18, %c0_19] : memref<1x128xf32, #tpu.memory_space<vmem>>, vector<1x128xf32>
      %26 = vector.broadcast %25 : vector<1x128xf32> to vector<128x128xf32>
      %27 = arith.addf %24, %26 : vector<128x128xf32>
      %c0_20 = arith.constant 0 : index
      %c0_21 = arith.constant 0 : index
      %28 = vector.load %arg8[%c0_20, %c0_21] : memref<128x128xf32, #tpu.memory_space<vmem>>, vector<128x128xf32>
      tpu.vector_store %arg8[%c0_20, %c0_21], %27 {strides = array<i32>} : memref<128x128xf32, #tpu.memory_space<vmem>>, vector<128x128xf32>,
    } else {
    }
    return
  }
  func.func @transform_0(%arg0: i32, %arg1: i32) -> (i32, i32) {
    %c0_i32 = arith.constant 0 : i32
    return %arg0, %arg1 : i32, i32
  }
  func.func @transform_1(%arg0: i32, %arg1: i32) -> (i32, i32) {
    %c0_i32 = arith.constant 0 : i32
    %c0_i32_0 = arith.constant 0 : i32
    %c0_i32_1 = arith.constant 0 : i32
    return %c0_i32, %c0_i32_0 : i32, i32
  }
  func.func @transform_2(%arg0: i32, %arg1: i32) -> (i32, i32) {
    %c0_i32 = arith.constant 0 : i32
    %c0_i32_0 = arith.constant 0 : i32
    %c0_i32_1 = arith.constant 0 : i32
    return %c0_i32, %c0_i32_0 : i32, i32
  }
  func.func @transform_3(%arg0: i32, %arg1: i32) -> (i32, i32) {
    %c0_i32 = arith.constant 0 : i32
    %c0_i32_0 = arith.constant 0 : i32
    return %arg1, %c0_i32 : i32, i32
  }
  func.func @transform_4(%arg0: i32, %arg1: i32) -> (i32, i32) {
    %c0_i32 = arith.constant 0 : i32
    %c0_i32_0 = arith.constant 0 : i32
    return %arg0, %c0_i32 : i32, i32
  }
  func.func @transform_5(%arg0: i32, %arg1: i32) -> (i32, i32) {
    %c0_i32 = arith.constant 0 : i32
    %c0_i32_0 = arith.constant 0 : i32
    %c0_i32_1 = arith.constant 0 : i32
    return %c0_i32, %c0_i32_0 : i32, i32
  }
  func.func @transform_6(%arg0: i32, %arg1: i32) -> (i32, i32) {
    %c0_i32 = arith.constant 0 : i32
    %c0_i32_0 = arith.constant 0 : i32
    return %arg0, %c0_i32 : i32, i32
  }
}

</mosaic_0001>

<bundles_post_ra>
// kernel: gcn_encoder.2
= control target key start
LH: loop header
LB: loop body
LE: loop exit
PB: predicated region body
PF: predicated region fallthrough
CT: control target
= control target key end

     0   :  { %s2838_s21 = smov 0   ;;  %s2840_s22 = smov 0   ;;  %s3562_s0 = inlined_call_operand.vmem [shape: bf16[512,512], index: 0, kind: input, shape index: {}]   ;;  %s3563_s1 = inlined_call_operand.vmem [shape: bf16[512,8], index: 1, kind: input, shape index: {}]   ;;  %s3564_s2 = inlined_call_operand.vmem [shape: bf16[8,128], index: 2, kind: input, shape index: {}]   ;;  %s3565_s3 = inlined_call_operand.vmem [shape: f32[512,1], index: 3, kind: input, shape index: {}, may-alias: {3,4}]   ;;  %s3566_s4 = inlined_call_operand.vmem [shape: f32[512,1], index: 4, kind: input, shape index: {}, may-alias: {3,4}]   ;;  %s3567_s5 = inlined_call_operand.vmem [shape: f32[1,128], index: 5, kind: input, shape index: {}]   ;;  %s3568_s6 = inlined_call_operand.vmem [shape: bf16[512,128], index: 6, kind: output, shape index: {}]  }
   0x1   :  { %s2842_s23 = smov 0  }
   0x2 LB: > { %s28_s24 = sadd.s32 1, %s2796_s22  ;;  %p2240_p0 = scmp.ge.s32.totalorder %s2800_s23, 1  ;;  %s2800_s23 = sphi %s2842_s23, %s16_s23   ;;  %s2796_s22 = sphi %s2840_s22, %s3570_s22   ;;  %s2792_s21 = sphi %s2838_s21, %s3569_s21  }
   0x3   : > { %p30_p1 = scmp.ge.s32.totalorder %s28_s24, 4  ;;  %p255_p2 = scmp.lt.s32.totalorder %s2800_s23, 5 }
   0x5   : > { %s3572_s24 = smov (%p30_p1, %s28_s24), 0  ;;  %p256_p3 = pnand %p2240_p0, %p255_p2 }
   0x6   : > { %v420_v0 = vld [vmem:[%s3564_s2] sm:$0xf] (!%p256_p3)  ;;  %vm678_vm0 = vcmask (!%p256_p3), 1043456   ;;  %v2802_v3 = vmov (!%p256_p3), 0   ;;  %vm581_vm1 = vcmask (!%p256_p3), 64512   ;;  %v2699_v6 = vld [vmem:[%s3563_s1 + $0x8] sm:$0xff] (!%p256_p3)  }
   0x7   : > { %259 = sbr.rel (%p256_p3) target bundleno = 643 (0x283), region = 44  ;;  %v987_v1 = vld [vmem:[%s3565_s3 + $0x80] sm:$0xff] (!%p256_p3)  ;;  %2697 = vset.pattern.permute.xlu1 (!%p256_p3), %v2802_v3  ;;  %2696 = vset.pattern.permute.xlu0 (!%p256_p3), %v2802_v3  ;;  %v680_v4 = vsel (!%p256_p3), %vm678_vm0, %v420_v0, 0  ;;  %v988_v7 = vld [vmem:[%s3565_s3 + $0x88] sm:$0xff] (!%p256_p3)  ;;  %v2700_v9 = vld [vmem:[%s3563_s1 + $0x10] sm:$0xff] (!%p256_p3)   ;;  %s2241_s17 = sshll.u32 (!%p256_p3), %s2792_s21, 4 }
   0x8   : > { %v971_v2 = vld [vmem:[%s3565_s3] sm:$0xff] (!%p256_p3)  ;;  %2670 = vmatprep.subr.msk.bf16.mxu0 (!%p256_p3), %vm678_vm0, %v420_v0  ;;  %1117 = vperm.xlu0 (!%p256_p3), %2696, %v987_v1   ;;  %v972_v8 = vld [vmem:[%s3565_s3 + $0x8] sm:$0xff] (!%p256_p3)  ;;  %v989_v10 = vld [vmem:[%s3565_s3 + $0x90] sm:$0xff] (!%p256_p3)  ;;  %p302_p4 = scmp.lt.s32.totalorder (!%p256_p3), %s2241_s17, 63 }
   0x9   : > { %v2698_v5 = vld [vmem:[%s3563_s1] sm:$0xff] (!%p256_p3)   ;;  %1037 = vperm.xlu1 (!%p256_p3), %2697, %v971_v2   ;;  %2589 = vmatpush3.bf16.msra.mxu0 (!%p256_p3), %v680_v4  ;;  %v990_v11 = vld [vmem:[%s3565_s3 + $0x98] sm:$0xff] (!%p256_p3)  ;;  %v973_v13 = vld [vmem:[%s3565_s3 + $0x10] sm:$0xff] (!%p256_p3) }
   0xa   : > { %2590 = vmatprep.mubr.msk.bf16.mxu0 (!%p256_p3), %vm581_vm1, %v2698_v5  ;;  %v2701_v12 = vld [vmem:[%s3563_s1 + $0x18] sm:$0xff] (!%p256_p3)   ;;  %v2702_v14 = vld [vmem:[%s3563_s1 + $0x20] sm:$0xff] (!%p256_p3)   ;;  %v992_v17 = vld [vmem:[%s3565_s3 + $0xa8] sm:$0xff] (!%p256_p3) }
   0xb   : > { %v974_v15 = vld [vmem:[%s3565_s3 + $0x18] sm:$0xff] (!%p256_p3)  ;;  %v991_v16 = vld [vmem:[%s3565_s3 + $0xa0] sm:$0xff] (!%p256_p3)  ;;  %v2703_v18 = vld [vmem:[%s3563_s1 + $0x28] sm:$0xff] (!%p256_p3)  }
   0xc   : > { %2591 = vmatmul.mubr.msk.bf16.vlgmr.msra.gmra.mrb[0].mxu0 (!%p256_p3), %vm581_vm1, %v2699_v6  ;;  %1122 = vperm.xlu0 (!%p256_p3), %2696, %v988_v7   ;;  %v975_v19 = vld [vmem:[%s3565_s3 + $0x20] sm:$0xff] (!%p256_p3)  ;;  %v2704_v20 = vld [vmem:[%s3563_s1 + $0x30] sm:$0xff] (!%p256_p3)   ;;  %v976_v21 = vld [vmem:[%s3565_s3 + $0x28] sm:$0xff] (!%p256_p3) }
   0xd   : > { %1042 = vperm.xlu1 (!%p256_p3), %2697, %v972_v8   ;;  %2594 = vmatprep.mubr.msk.bf16.mxu0 (!%p256_p3), %vm581_vm1, %v2700_v9  ;;  %v993_v22 = vld [vmem:[%s3565_s3 + $0xb0] sm:$0xff] (!%p256_p3)  ;;  %v994_v23 = vld [vmem:[%s3565_s3 + $0xb8] sm:$0xff] (!%p256_p3)  ;;  %v2706_v26 = vld [vmem:[%s3563_s1 + $0x40] sm:$0xff] (!%p256_p3)  }
   0xe   : > { %v2705_v24 = vld [vmem:[%s3563_s1 + $0x38] sm:$0xff]   ;;  %v977_v25 = vld [vmem:[%s3565_s3 + $0x30] sm:$0xff]  ;;  %v995_v28 = vld [vmem:[%s3565_s3 + $0xc0] sm:$0xff]  ;;  %s3574_s17 = smov (!%p302_p4, %s2241_s17), 63 }
   0xf   : > { %v978_v27 = vld [vmem:[%s3565_s3 + $0x38] sm:$0xff]  ;;  %v996_v29 = vld [vmem:[%s3565_s3 + $0xc8] sm:$0xff]  ;;  %v979_v31 = vld [vmem:[%s3565_s3 + $0x40] sm:$0xff]  ;;  %s2363_s11 = sshll.u32 %s3574_s17, 4  ;;  %s2245_s18 = sshll.u32 %s3574_s17, 3 }
  0x10   : > { %1127 = vperm.xlu0 %2696, %v989_v10   ;;  %v2707_v30 = vld [vmem:[%s3563_s1 + $0x48] sm:$0xff]   ;;  %v2708_v32 = vld [vmem:[%s3563_s1 + $0x50] sm:$0xff]   ;;  %v998_v35 = vld [vmem:[%s3565_s3 + $0xd8] sm:$0xff]  ;;  %s3030_s29 = scalar_lea.vmem %s3562_s0, %s2363_s11  ;;  %s3193_s7 = scalar_lea.vmem %s3566_s4, %s2245_s18 }
  0x11   : > { %1132 = vperm.xlu1 %2697, %v990_v11   ;;  %v980_v33 = vld [vmem:[%s3565_s3 + $0x48] sm:$0xff]  ;;  %v997_v34 = vld [vmem:[%s3565_s3 + $0xd0] sm:$0xff]  ;;  %v2709_v36 = vld [vmem:[%s3563_s1 + $0x58] sm:$0xff]   ;;  %s2247_s9 = sshll.u32 %s3574_s17, 2 }
  0x12   : > { %v981_v37 = vld [vmem:[%s3565_s3 + $0x50] sm:$0xff]  ;;  %v2710_v38 = vld [vmem:[%s3563_s1 + $0x60] sm:$0xff]   ;;  %v982_v39 = vld [vmem:[%s3565_s3 + $0x58] sm:$0xff]  ;;  %s3516_s12 = scalar_lea.vmem %s3568_s6, %s2247_s9 }
  0x13   : > { %v999_v40 = vld [vmem:[%s3565_s3 + $0xe0] sm:$0xff]  ;;  %v1000_v41 = vld [vmem:[%s3565_s3 + $0xe8] sm:$0xff]  ;;  %v2712_v44 = vld [vmem:[%s3563_s1 + $0x70] sm:$0xff]  }
  0x14   : > { %2595 = vmatmul.mubr.msk.bf16.gmra.mrb[4].mxu0 %vm581_vm1, %v2701_v12  ;;  %1047 = vperm.xlu0 %2696, %v973_v13   ;;  %v2711_v42 = vld [vmem:[%s3563_s1 + $0x68] sm:$0xff]   ;;  %v983_v43 = vld [vmem:[%s3565_s3 + $0x60] sm:$0xff]  ;;  %v1001_v46 = vld [vmem:[%s3565_s3 + $0xf0] sm:$0xff] }
  0x15   : > { %1052 = vperm.xlu1 %2697, %v974_v15   ;;  %2598 = vmatprep.mubr.msk.bf16.mxu0 %vm581_vm1, %v2702_v14  ;;  %v984_v45 = vld [vmem:[%s3565_s3 + $0x68] sm:$0xff]  ;;  %v1002_v47 = vld [vmem:[%s3565_s3 + $0xf8] sm:$0xff]  ;;  %v985_v49 = vld [vmem:[%s3565_s3 + $0x70] sm:$0xff] }
  0x16   : > { %v2713_v48 = vld [vmem:[%s3563_s1 + $0x78] sm:$0xff]   ;;  %v2714_v51 = vld [vmem:[%s3563_s1 + $0x80] sm:$0xff]   ;;  %v1020_v53 = vld [vmem:[%s3565_s3 + $0x188] sm:$0xff] }
  0x17   : > { %v986_v50 = vld [vmem:[%s3565_s3 + $0x78] sm:$0xff]  ;;  %v1019_v52 = vld [vmem:[%s3565_s3 + $0x180] sm:$0xff]  ;;  %v2715_v54 = vld [vmem:[%s3563_s1 + $0x88] sm:$0xff]  }
  0x18   : > { %1137 = vperm.xlu0 %2696, %v991_v16   ;;  %v1003_v55 = vld [vmem:[%s3565_s3 + $0x100] sm:$0xff]  ;;  %v2716_v56 = vld [vmem:[%s3563_s1 + $0x90] sm:$0xff]   ;;  %v1004_v57 = vld [vmem:[%s3565_s3 + $0x108] sm:$0xff] }
  0x19   : > { %1142 = vperm.xlu1 %2697, %v992_v17   ;;  %v1021_v58 = vld [vmem:[%s3565_s3 + $0x190] sm:$0xff]  ;;  %v1022_v59 = vld [vmem:[%s3565_s3 + $0x198] sm:$0xff]  ;;  %v2718_v62 = vld [vmem:[%s3563_s1 + $0xa0] sm:$0xff]  }
  0x1a   : > { %v2717_v60 = vld [vmem:[%s3563_s1 + $0x98] sm:$0xff]   ;;  %v1005_v61 = vld [vmem:[%s3565_s3 + $0x110] sm:$0xff]  ;;  %v1023_v0 = vld [vmem:[%s3565_s3 + $0x1a0] sm:$0xff] }
  0x1b   : > { %v1006_v63 = vld [vmem:[%s3565_s3 + $0x118] sm:$0xff]  ;;  %v1024_v1 = vld [vmem:[%s3565_s3 + $0x1a8] sm:$0xff]  ;;  %v1007_v3 = vld [vmem:[%s3565_s3 + $0x120] sm:$0xff] }
  0x1c   : > { %2599 = vmatmul.mubr.msk.bf16.gmra.mrb[8].mxu0 %vm581_vm1, %v2703_v18  ;;  %1057 = vperm.xlu0 %2696, %v975_v19   ;;  %v2719_v2 = vld [vmem:[%s3563_s1 + $0xa8] sm:$0xff]   ;;  %v2720_v4 = vld [vmem:[%s3563_s1 + $0xb0] sm:$0xff]   ;;  %v1026_v7 = vld [vmem:[%s3565_s3 + $0x1b8] sm:$0xff] }
  0x1d   : > { %1062 = vperm.xlu1 %2697, %v976_v21   ;;  %2602 = vmatprep.mubr.msk.bf16.mxu0 %vm581_vm1, %v2704_v20  ;;  %v1008_v5 = vld [vmem:[%s3565_s3 + $0x128] sm:$0xff]  ;;  %v1025_v6 = vld [vmem:[%s3565_s3 + $0x1b0] sm:$0xff]  ;;  %v2721_v8 = vld [vmem:[%s3563_s1 + $0xb8] sm:$0xff]  }
  0x1e   : > { %v1009_v9 = vld [vmem:[%s3565_s3 + $0x130] sm:$0xff]  ;;  %v2722_v10 = vld [vmem:[%s3563_s1 + $0xc0] sm:$0xff]   ;;  %v1010_v11 = vld [vmem:[%s3565_s3 + $0x138] sm:$0xff] }
  0x1f   : > { %v1027_v12 = vld [vmem:[%s3565_s3 + $0x1c0] sm:$0xff]  ;;  %v1028_v13 = vld [vmem:[%s3565_s3 + $0x1c8] sm:$0xff]  ;;  %v2724_v16 = vld [vmem:[%s3563_s1 + $0xd0] sm:$0xff]  }
  0x20   : > { %1147 = vperm.xlu0 %2696, %v993_v22   ;;  %v2723_v14 = vld [vmem:[%s3563_s1 + $0xc8] sm:$0xff]   ;;  %v1011_v15 = vld [vmem:[%s3565_s3 + $0x140] sm:$0xff]  ;;  %v1029_v18 = vld [vmem:[%s3565_s3 + $0x1d0] sm:$0xff] }
  0x21   : > { %1152 = vperm.xlu1 %2697, %v994_v23   ;;  %v1012_v17 = vld [vmem:[%s3565_s3 + $0x148] sm:$0xff]  ;;  %v1030_v19 = vld [vmem:[%s3565_s3 + $0x1d8] sm:$0xff]  ;;  %v1013_v21 = vld [vmem:[%s3565_s3 + $0x150] sm:$0xff] }
  0x22   : > { %v2725_v20 = vld [vmem:[%s3563_s1 + $0xd8] sm:$0xff]   ;;  %v2726_v22 = vld [vmem:[%s3563_s1 + $0xe0] sm:$0xff]  }
  0x23   : > { %v1014_v23 = vld [vmem:[%s3565_s3 + $0x158] sm:$0xff] }
  0x24   : > { %2603 = vmatmul.mubr.msk.bf16.gmra.mrb[12].mxu0 %vm581_vm1, %v2705_v24  ;;  %1067 = vperm.xlu0 %2696, %v977_v25   ;;  %v1031_v24 = vld [vmem:[%s3565_s3 + $0x1e0] sm:$0xff]  ;;  %v1032_v25 = vld [vmem:[%s3565_s3 + $0x1e8] sm:$0xff] }
  0x25   : > { %1072 = vperm.xlu1 %2697, %v978_v27   ;;  %2606 = vmatprep.mubr.msk.bf16.mxu0 %vm581_vm1, %v2706_v26  ;;  %v2727_v26 = vld [vmem:[%s3563_s1 + $0xe8] sm:$0xff]   ;;  %v1015_v27 = vld [vmem:[%s3565_s3 + $0x160] sm:$0xff] }
  0x28   : > { %1157 = vperm.xlu0 %2696, %v995_v28   ;;  %v2728_v28 = vld [vmem:[%s3563_s1 + $0xf0] sm:$0xff]  }
  0x29   : > { %1162 = vperm.xlu1 %2697, %v996_v29   ;;  %v1016_v29 = vld [vmem:[%s3565_s3 + $0x168] sm:$0xff] }
  0x2c   : > { %2607 = vmatmul.mubr.msk.bf16.gmra.mrb[16].mxu0 %vm581_vm1, %v2707_v30  ;;  %1077 = vperm.xlu0 %2696, %v979_v31   ;;  %v1033_v30 = vld [vmem:[%s3565_s3 + $0x1f0] sm:$0xff]  ;;  %v1034_v31 = vld [vmem:[%s3565_s3 + $0x1f8] sm:$0xff] }
  0x2d   : > { %1082 = vperm.xlu1 %2697, %v980_v33   ;;  %2610 = vmatprep.mubr.msk.bf16.mxu0 %vm581_vm1, %v2708_v32  ;;  %v2729_v32 = vld [vmem:[%s3563_s1 + $0xf8] sm:$0xff]   ;;  %v1017_v33 = vld [vmem:[%s3565_s3 + $0x170] sm:$0xff] }
  0x30   : > { %1167 = vperm.xlu0 %2696, %v997_v34   ;;  %v1018_v34 = vld [vmem:[%s3565_s3 + $0x178] sm:$0xff] }
  0x31   : > { %1172 = vperm.xlu1 %2697, %v998_v35   ;;  %v1888_v35 = vld [vmem:[%s3193_s7] sm:$0xff] }
  0x34   : > { %2611 = vmatmul.mubr.msk.bf16.gmra.mrb[20].mxu0 %vm581_vm1, %v2709_v36  ;;  %1087 = vperm.xlu0 %2696, %v981_v37   ;;  %v1889_v36 = vld [vmem:[%s3193_s7 + $0x8] sm:$0xff] }
  0x35   : > { %1092 = vperm.xlu1 %2697, %v982_v39   ;;  %2614 = vmatprep.mubr.msk.bf16.mxu0 %vm581_vm1, %v2710_v38  ;;  %v1890_v39 = vld [vmem:[%s3193_s7 + $0x10] sm:$0xff] }
  0x38   : > { %1177 = vperm.xlu0 %2696, %v999_v40   ;;  %v1891_v40 = vld [vmem:[%s3193_s7 + $0x18] sm:$0xff] }
  0x39   : > { %1182 = vperm.xlu1 %2697, %v1000_v41  }
  0x3c   : > { %2615 = vmatmul.mubr.msk.bf16.gmra.mrb[24].mxu0 %vm581_vm1, %v2711_v42  ;;  %1097 = vperm.xlu0 %2696, %v983_v43   ;;  %v1892_v43 = vld [vmem:[%s3193_s7 + $0x20] sm:$0xff] }
  0x3d   : > { %1102 = vperm.xlu1 %2697, %v984_v45   ;;  %2618 = vmatprep.mubr.msk.bf16.mxu0 %vm581_vm1, %v2712_v44  ;;  %v1893_v44 = vld [vmem:[%s3193_s7 + $0x28] sm:$0xff] }
  0x40   : > { %1187 = vperm.xlu0 %2696, %v1001_v46  }
  0x41   : > { %1192 = vperm.xlu1 %2697, %v1002_v47   ;;  %v1894_v47 = vld [vmem:[%s3193_s7 + $0x30] sm:$0xff] }
  0x44   : > { %2619 = vmatmul.mubr.msk.bf16.gmra.mrb[28].mxu0 %vm581_vm1, %v2713_v48  ;;  %1107 = vperm.xlu0 %2696, %v985_v49   ;;  %v1895_v48 = vld [vmem:[%s3193_s7 + $0x38] sm:$0xff] }
  0x45   : > { %1112 = vperm.xlu1 %2697, %v986_v50   ;;  %2622 = vmatprep.mubr.msk.bf16.mxu0 %vm581_vm1, %v2714_v51  ;;  %v1896_v51 = vld [vmem:[%s3193_s7 + $0x40] sm:$0xff] }
  0x48   : > { %1277 = vperm.xlu0 %2696, %v1019_v52   ;;  %v1897_v52 = vld [vmem:[%s3193_s7 + $0x48] sm:$0xff] }
  0x49   : > { %1282 = vperm.xlu1 %2697, %v1020_v53  }
  0x4c   : > { %2623 = vmatmul.mubr.msk.bf16.gmra.mrb[32].mxu0 %vm581_vm1, %v2715_v54  ;;  %1197 = vperm.xlu0 %2696, %v1003_v55   ;;  %v1898_v55 = vld [vmem:[%s3193_s7 + $0x50] sm:$0xff] }
  0x4d   : > { %1202 = vperm.xlu1 %2697, %v1004_v57   ;;  %2626 = vmatprep.mubr.msk.bf16.mxu0 %vm581_vm1, %v2716_v56  ;;  %v1899_v56 = vld [vmem:[%s3193_s7 + $0x58] sm:$0xff] }
  0x50   : > { %1287 = vperm.xlu0 %2696, %v1021_v58  }
  0x51   : > { %1292 = vperm.xlu1 %2697, %v1022_v59   ;;  %v1900_v59 = vld [vmem:[%s3193_s7 + $0x60] sm:$0xff] }
  0x54   : > { %2627 = vmatmul.mubr.msk.bf16.gmra.mrb[36].mxu0 %vm581_vm1, %v2717_v60  ;;  %1207 = vperm.xlu0 %2696, %v1005_v61   ;;  %v1901_v60 = vld [vmem:[%s3193_s7 + $0x68] sm:$0xff]  ;;  %v1902_v61 = vld [vmem:[%s3193_s7 + $0x70] sm:$0xff] }
  0x55   : > { %1212 = vperm.xlu1 %2697, %v1006_v63   ;;  %2630 = vmatprep.mubr.msk.bf16.mxu0 %vm581_vm1, %v2718_v62  ;;  %v1903_v63 = vld [vmem:[%s3193_s7 + $0x78] sm:$0xff] }
  0x58   : > { %1297 = vperm.xlu0 %2696, %v1023_v0  }
  0x59   : > { %1302 = vperm.xlu1 %2697, %v1024_v1  }
  0x5c   : > { %2631 = vmatmul.mubr.msk.bf16.gmra.mrb[40].mxu0 %vm581_vm1, %v2719_v2  ;;  %1217 = vperm.xlu0 %2696, %v1007_v3   ;;  %v2732_v3 = vld [vmem:[%s3030_s29 + $0x24] ss:$16 sps:$4 sm:$0xff]  }
  0x5d   : > { %1222 = vperm.xlu1 %2697, %v1008_v5   ;;  %2634 = vmatprep.mubr.msk.bf16.mxu0 %vm581_vm1, %v2720_v4 }
  0x5e   : > { %1699 = vmatprep.mubr.bf16.mxu1 %v2732_v3 }
  0x60   : > { %1307 = vperm.xlu0 %2696, %v1025_v6  }
  0x61   : > { %1312 = vperm.xlu1 %2697, %v1026_v7  }
  0x64   : > { %2635 = vmatmul.mubr.msk.bf16.gmra.mrb[44].mxu0 %vm581_vm1, %v2721_v8  ;;  %1227 = vperm.xlu0 %2696, %v1009_v9  }
  0x65   : > { %1232 = vperm.xlu1 %2697, %v1010_v11   ;;  %2638 = vmatprep.mubr.msk.bf16.mxu0 %vm581_vm1, %v2722_v10 }
  0x68   : > { %1317 = vperm.xlu0 %2696, %v1027_v12  }
  0x69   : > { %1322 = vperm.xlu1 %2697, %v1028_v13  }
  0x6c   : > { %2639 = vmatmul.mubr.msk.bf16.gmra.mrb[48].mxu0 %vm581_vm1, %v2723_v14  ;;  %1237 = vperm.xlu0 %2696, %v1011_v15  }
  0x6d   : > { %1242 = vperm.xlu1 %2697, %v1012_v17   ;;  %2642 = vmatprep.mubr.msk.bf16.mxu0 %vm581_vm1, %v2724_v16 }
  0x70   : > { %1327 = vperm.xlu0 %2696, %v1029_v18  }
  0x71   : > { %1332 = vperm.xlu1 %2697, %v1030_v19  }
  0x74   : > { %2643 = vmatmul.mubr.msk.bf16.gmra.mrb[52].mxu0 %vm581_vm1, %v2725_v20  ;;  %1247 = vperm.xlu0 %2696, %v1013_v21  }
  0x75   : > { %1252 = vperm.xlu1 %2697, %v1014_v23   ;;  %2646 = vmatprep.mubr.msk.bf16.mxu0 %vm581_vm1, %v2726_v22 }
  0x78   : > { %1337 = vperm.xlu0 %2696, %v1031_v24  }
  0x79   : > { %1342 = vperm.xlu1 %2697, %v1032_v25  }
  0x7c   : > { %2647 = vmatmul.mubr.msk.bf16.gmra.mrb[56].mxu0 %vm581_vm1, %v2727_v26  ;;  %1257 = vperm.xlu0 %2696, %v1015_v27  }
  0x7d   : > { %1262 = vperm.xlu1 %2697, %v1016_v29   ;;  %2650 = vmatprep.mubr.msk.bf16.mxu0 %vm581_vm1, %v2728_v28 }
  0x80   : > { %1347 = vperm.xlu0 %2696, %v1033_v30  }
  0x81   : > { %1352 = vperm.xlu1 %2697, %v1034_v31  }
  0x84   : > { %2651 = vmatmul.mubr.msk.bf16.gmra.mrb[60].mxu0 %vm581_vm1, %v2729_v32  ;;  %1267 = vperm.xlu0 %2696, %v1017_v33   ;;  %v2753_v32 = vld [vmem:[%s3030_s29 + $0x4] ss:$16 sps:$4 sm:$0xff]  }
  0x85   : > { %1272 = vperm.xlu1 %2697, %v1018_v34   ;;  %1691 = vmatprep.mubr.bf16.mxu0 %v2753_v32 }
  0x87   : > { %v3198_v37 = vpop.permute.xlu0 %1117 }
  0x88   : > { %v3200_v38 = vpop.permute.xlu1 %1037  ;;  %1922 = vperm.xlu0 %2696, %v1888_v35  }
  0x89   : > { %1927 = vperm.xlu1 %2697, %v1889_v36  }
  0x8b   : > { %v3204_v41 = vpop.permute.xlu0 %1122 }
  0x8c   : > { %v3206_v42 = vpop.permute.xlu1 %1042  ;;  %1932 = vperm.xlu0 %2696, %v1890_v39  }
  0x8d   : > { %1937 = vperm.xlu1 %2697, %v1891_v40  }
  0x8f   : > { %v3210_v45 = vpop.permute.xlu0 %1127 }
  0x90   : > { %v3212_v46 = vpop.permute.xlu1 %1132  ;;  %1942 = vperm.xlu0 %2696, %v1892_v43  }
  0x91   : > { %1947 = vperm.xlu1 %2697, %v1893_v44  }
  0x93   : > { %v1048_v49 = vpop.permute.xlu0 %1047 }
  0x94   : > { %v1053_v50 = vpop.permute.xlu1 %1052  ;;  %1952 = vperm.xlu0 %2696, %v1894_v47  }
  0x95   : > { %1957 = vperm.xlu1 %2697, %v1895_v48  }
  0x97   : > { %v3218_v53 = vpop.permute.xlu0 %1137 }
  0x98   : > { %v3220_v54 = vpop.permute.xlu1 %1142  ;;  %1962 = vperm.xlu0 %2696, %v1896_v51  }
  0x99   : > { %1967 = vperm.xlu1 %2697, %v1897_v52  }
  0x9b   : > { %v1058_v57 = vpop.permute.xlu0 %1057 }
  0x9c   : > { %1972 = vperm.xlu0 %2696, %v1898_v55   ;;  %v1063_v58 = vpop.permute.xlu1 %1062 }
  0x9d   : > { %1977 = vperm.xlu1 %2697, %v1899_v56  }
  0x9f   : > { %v3227_v62 = vpop.permute.xlu0 %1147 }
  0xa0   : > { %1982 = vperm.xlu0 %2696, %v1900_v59   ;;  %v3230_v0 = vpop.permute.xlu1 %1152 }
  0xa1   : > { %1987 = vperm.xlu1 %2697, %v1901_v60  }
  0xa3   : > { %v1068_v1 = vpop.permute.xlu0 %1067 }
  0xa4   : > { %1992 = vperm.xlu0 %2696, %v1902_v61   ;;  %v1073_v2 = vpop.permute.xlu1 %1072 }
  0xa5   : > { %1997 = vperm.xlu1 %2697, %v1903_v63  }
  0xa7   : > { %v3233_v4 = vpop.permute.xlu0 %1157 }
  0xa8   : > { %v3235_v5 = vpop.permute.xlu1 %1162 }
  0xab   : > { %v1078_v6 = vpop.permute.xlu0 %1077 }
  0xac   : > { %v1083_v7 = vpop.permute.xlu1 %1082 }
  0xaf   : > { %v3237_v8 = vpop.permute.xlu0 %1167 }
  0xb0   : > { %v3239_v9 = vpop.permute.xlu1 %1172 }
  0xb3   : > { %v1088_v10 = vpop.permute.xlu0 %1087 }
  0xb4   : > { %v1093_v11 = vpop.permute.xlu1 %1092 }
  0xb7   : > { %v3241_v12 = vpop.permute.xlu0 %1177 }
  0xb8   : > { %v3243_v13 = vpop.permute.xlu1 %1182 }
  0xbb   : > { %v1098_v14 = vpop.permute.xlu0 %1097 }
  0xbc   : > { %v1103_v15 = vpop.permute.xlu1 %1102 }
  0xbf   : > { %v3245_v16 = vpop.permute.xlu0 %1187 }
  0xc0   : > { %v3247_v17 = vpop.permute.xlu1 %1192 }
  0xc3   : > { %v1108_v18 = vpop.permute.xlu0 %1107 }
  0xc4   : > { %v1113_v19 = vpop.permute.xlu1 %1112 }
  0xc7   : > { %v3249_v20 = vpop.permute.xlu0 %1277 }
  0xc8   : > { %v3251_v21 = vpop.permute.xlu1 %1282 }
  0xcb   : > { %v3255_v30 = vpop.permute.xlu0 %1197 }
  0xcc   : > { %v3260_v33 = vpop.permute.xlu1 %1202 }
  0xcf   : > { %v3262_v40 = vpop.permute.xlu0 %1287 }
  0xd3   : > { %v3270_v52 = vpop.permute.xlu0 %1207 }
  0xdf   : > { %v2592_v22 = vpop.f32.mrb[0].mxu0 }
  0xe0   : > { %v716_v23 = vpop.f32.mrb[1].mxu0  ;;  %v1357_v25 = vmul.f32 %v2592_v22, %v1048_v49 }
  0xe1   : > { %v2593_v24 = vpop.f32.mrb[2].mxu0  ;;  %v1355_v28 = vmul.f32 %v3200_v38, %v716_v23  ;;  %v3264_v38 = vpop.permute.xlu1 %1292 }
  0xe2   : > { %v1358_v26 = vmul.f32 %v2593_v24, %v1053_v50  ;;  %v719_v27 = vpop.f32.mrb[3].mxu0 }
  0xe3   : > { %v1356_v29 = vmul.f32 %v3206_v42, %v719_v27 }
  0xe4   : > { %v3257_v31 = vpack.c.bf16 %v1358_v26, %v1357_v25 }
  0xe5   : > { %v1419_v34 = vpack.c.bf16 %v1356_v29, %v1355_v28  ;;  %v3272_v56 = vpop.permute.xlu1 %1212 }
  0xe7   : > { %v2596_v35 = vpop.f32.mrb[4].mxu0 }
  0xe8   : > { %v732_v36 = vpop.f32.mrb[5].mxu0  ;;  %v1361_v43 = vmul.f32 %v2596_v35, %v1068_v1 }
  0xe9   : > { %v2597_v39 = vpop.f32.mrb[6].mxu0  ;;  %v1359_v42 = vmul.f32 %v1058_v57, %v732_v36  ;;  %v3280_v22 = vpop.permute.xlu1 %1302 }
  0xea   : > { %v1362_v44 = vmul.f32 %v2597_v39, %v1073_v2  ;;  %v735_v47 = vpop.f32.mrb[7].mxu0 }
  0xeb   : > { %v1360_v48 = vmul.f32 %v1063_v58, %v735_v47  ;;  %v3278_v58 = vpop.permute.xlu0 %1297 }
  0xec   : > { %v3266_v49 = vpack.c.bf16 %v1362_v44, %v1361_v43 }
  0xed   : > { %v3268_v50 = vpack.c.bf16 %v1360_v48, %v1359_v42 }
  0xef   : > { %v2600_v51 = vpop.f32.mrb[8].mxu0 }
  0xf0   : > { %v748_v55 = vpop.f32.mrb[9].mxu0  ;;  %v1365_v60 = vmul.f32 %v2600_v51, %v1088_v10 }
  0xf1   : > { %v2601_v59 = vpop.f32.mrb[10].mxu0  ;;  %v1363_v1 = vmul.f32 %v1078_v6, %v748_v55 }
  0xf2   : > { %v1366_v61 = vmul.f32 %v2601_v59, %v1093_v11  ;;  %v751_v63 = vpop.f32.mrb[11].mxu0  ;;  %v3282_v11 = vpop.permute.xlu0 %1217 }
  0xf3   : > { %v1364_v2 = vmul.f32 %v1083_v7, %v751_v63  ;;  %v3286_v7 = vpop.permute.xlu1 %1222 }
  0xf4   : > { %v3274_v3 = vpack.c.bf16 %v1366_v61, %v1365_v60 }
  0xf5   : > { %v3276_v57 = vpack.c.bf16 %v1364_v2, %v1363_v1 }
  0xf6   : > { %v3290_v43 = vpop.permute.xlu0 %1307 }
  0xf7   : > { %v2604_v23 = vpop.f32.mrb[12].mxu0 }
  0xf8   : > { %v764_v24 = vpop.f32.mrb[13].mxu0  ;;  %v1369_v26 = vmul.f32 %v2604_v23, %v1108_v18 }
  0xf9   : > { %v2605_v25 = vpop.f32.mrb[14].mxu0  ;;  %v1367_v29 = vmul.f32 %v1098_v14, %v764_v24  ;;  %v3294_v14 = vpop.permute.xlu1 %1312 }
  0xfa   : > { %v1370_v27 = vmul.f32 %v2605_v25, %v1113_v19  ;;  %v767_v28 = vpop.f32.mrb[15].mxu0  ;;  %v3298_v55 = vpop.permute.xlu0 %1227 }
  0xfb   : > { %v1368_v10 = vmul.f32 %v1103_v15, %v767_v28 }
  0xfc   : > { %v3284_v6 = vpack.c.bf16 %v1370_v27, %v1369_v26 }
  0xfd   : > { %v3288_v32 = vpack.c.bf16 %v1368_v10, %v1367_v29 }
  0xfe   : > { %v3308_v2 = vpop.permute.xlu0 %1317 }
  0xff   : > { %v2608_v35 = vpop.f32.mrb[16].mxu0 }
 0x100   : > { %v780_v36 = vpop.f32.mrb[17].mxu0  ;;  %v1373_v44 = vmul.f32 %v2608_v35, %v3210_v45  ;;  %v3300_v45 = vpop.permute.xlu1 %1232 }
 0x101   : > { %v2609_v39 = vpop.f32.mrb[18].mxu0  ;;  %v1371_v15 = vmul.f32 %v3198_v37, %v780_v36 }
 0x102   : > { %v1374_v18 = vmul.f32 %v2609_v39, %v3212_v46  ;;  %v783_v19 = vpop.f32.mrb[19].mxu0  ;;  %v3318_v27 = vpop.permute.xlu0 %1237 }
 0x103   : > { %v1372_v47 = vmul.f32 %v3204_v41, %v783_v19 }
 0x104   : > { %v1428_v42 = vpack.c.bf16 %v1374_v18, %v1373_v44  ;;  %v3310_v23 = vpop.permute.xlu1 %1322 }
 0x105   : > { %v1427_v48 = vpack.c.bf16 %v1372_v47, %v1371_v15 }
 0x107   : > { %v2612_v51 = vpop.f32.mrb[20].mxu0  ;;  %2460 = vmatprep.subr.bf16.mxu0 %v1427_v48  ;;  %2654 = vmatprep.subr.bf16.mxu1 %v1427_v48 }
 0x108   : > { %v796_v59 = vpop.f32.mrb[21].mxu0  ;;  %2461 = vmatpush3.bf16.msra.mxu0 %v1419_v34  ;;  %2662 = vmatpush3.bf16.msra.mxu1 %v1419_v34  ;;  %v1377_v60 = vmul.f32 %v2612_v51, %v3227_v62  ;;  %v2730_v51 = vld [vmem:[%s3030_s29 + $0x20] ss:$16 sps:$4 sm:$0xff]  }
 0x109   : > { %v2613_v46 = vpop.f32.mrb[22].mxu0  ;;  %2462 = vmatprep.subr.bf16.mxu0 %v1428_v42  ;;  %2655 = vmatprep.subr.bf16.mxu1 %v1428_v42  ;;  %v1375_v61 = vmul.f32 %v3218_v53, %v796_v59  ;;  %v2751_v59 = vld [vmem:[%s3030_s29] ss:$16 sps:$4 sm:$0xff]  }
 0x10a   : > { %v1378_v37 = vmul.f32 %v2613_v46, %v3230_v0  ;;  %v799_v41 = vpop.f32.mrb[23].mxu0 }
 0x10b   : > { %v1376_v63 = vmul.f32 %v3220_v54, %v799_v41 }
 0x10c   : > { %v1430_v1 = vpack.c.bf16 %v1378_v37, %v1377_v60  ;;  %2463 = vmatpush3.bf16.msra.mxu0 %v3257_v31  ;;  %2663 = vmatpush3.bf16.msra.mxu1 %v3257_v31 }
 0x10d   : > { %v1429_v34 = vpack.c.bf16 %v1376_v63, %v1375_v61 }
 0x10f   : > { %v2616_v24 = vpop.f32.mrb[24].mxu0  ;;  %2464 = vmatprep.subr.bf16.mxu0 %v1429_v34  ;;  %2656 = vmatprep.subr.bf16.mxu1 %v1429_v34  ;;  %v2735_v34 = vld [vmem:[%s3030_s29 + $0x40] ss:$16 sps:$4 sm:$0xff]  }
 0x110   : > { %v812_v62 = vpop.f32.mrb[25].mxu0  ;;  %2465 = vmatpush3.bf16.msra.mxu0 %v3268_v50  ;;  %2664 = vmatpush3.bf16.msra.mxu1 %v3268_v50  ;;  %v1381_v54 = vmul.f32 %v2616_v24, %v3237_v8  ;;  %v3322_v50 = vpop.permute.xlu1 %1242 }
 0x111   : > { %v2617_v53 = vpop.f32.mrb[26].mxu0  ;;  %2466 = vmatprep.subr.bf16.mxu0 %v1430_v1  ;;  %2657 = vmatprep.subr.bf16.mxu1 %v1430_v1  ;;  %v1379_v25 = vmul.f32 %v3233_v4, %v812_v62 }
 0x112   : > { %v1382_v0 = vmul.f32 %v2617_v53, %v3239_v9  ;;  %v815_v31 = vpop.f32.mrb[27].mxu0  ;;  %v2736_v53 = vld [vmem:[%s3030_s29 + $0x64] ss:$16 sps:$4 sm:$0xff]  }
 0x113   : > { %v1380_v26 = vmul.f32 %v3235_v5, %v815_v31  ;;  %v3326_v5 = vpop.permute.xlu0 %1327 }
 0x114   : > { %v1432_v28 = vpack.c.bf16 %v1382_v0, %v1381_v54  ;;  %2467 = vmatpush3.bf16.msra.mxu0 %v3266_v49  ;;  %2665 = vmatpush3.bf16.msra.mxu1 %v3266_v49  ;;  %v3330_v36 = vpop.permute.xlu1 %1332 }
 0x115   : > { %v1431_v29 = vpack.c.bf16 %v1380_v26, %v1379_v25 }
 0x117   : > { %v2620_v10 = vpop.f32.mrb[28].mxu0  ;;  %2468 = vmatprep.subr.bf16.mxu0 %v1431_v29  ;;  %2658 = vmatprep.subr.bf16.mxu1 %v1431_v29 }
 0x118   : > { %v828_v8 = vpop.f32.mrb[29].mxu0  ;;  %2469 = vmatpush3.bf16.msra.mxu0 %v3276_v57  ;;  %2666 = vmatpush3.bf16.msra.mxu1 %v3276_v57  ;;  %v1385_v9 = vmul.f32 %v2620_v10, %v3245_v16  ;;  %v1248_v16 = vpop.permute.xlu0 %1247 }
 0x119   : > { %v2621_v4 = vpop.f32.mrb[30].mxu0  ;;  %2470 = vmatprep.subr.bf16.mxu0 %v1432_v28  ;;  %2659 = vmatprep.subr.bf16.mxu1 %v1432_v28  ;;  %v1383_v39 = vmul.f32 %v3241_v12, %v828_v8  ;;  %v1253_v12 = vpop.permute.xlu1 %1252  ;;  %v2738_v8 = vld [vmem:[%s3030_s29 + $0x60] ss:$16 sps:$4 sm:$0xff]  }
 0x11a   : > { %v1386_v49 = vmul.f32 %v2621_v4, %v3247_v17  ;;  %v831_v35 = vpop.f32.mrb[31].mxu0 }
 0x11b   : > { %v1384_v44 = vmul.f32 %v3243_v13, %v831_v35 }
 0x11c   : > { %v1434_v18 = vpack.c.bf16 %v1386_v49, %v1385_v9  ;;  %2471 = vmatpush3.bf16.msra.mxu0 %v3274_v3  ;;  %2667 = vmatpush3.bf16.msra.mxu1 %v3274_v3  ;;  %v3359_v46 = vpop.permute.xlu0 %1337  ;;  %v2739_v9 = vld [vmem:[%s3030_s29 + $0x84] ss:$16 sps:$4 sm:$0xff]  }
 0x11d   : > { %v1433_v57 = vpack.c.bf16 %v1384_v44, %v1383_v39 }
 0x11f   : > { %v2624_v19 = vpop.f32.mrb[32].mxu0  ;;  %2472 = vmatprep.subr.bf16.mxu0 %v1433_v57  ;;  %2660 = vmatprep.subr.bf16.mxu1 %v1433_v57 }
 0x120   : > { %v844_v17 = vpop.f32.mrb[33].mxu0  ;;  %2473 = vmatpush3.bf16.msra.mxu0 %v3288_v32  ;;  %2668 = vmatpush3.bf16.msra.mxu1 %v3288_v32  ;;  %v3339_v15 = vmul.f32 %v2624_v19, %v3270_v52  ;;  %v2733_v52 = vld [vmem:[%s3030_s29 + $0x44] ss:$16 sps:$4 sm:$0xff]   ;;  %v1258_v24 = vpop.permute.xlu0 %1257 }
 0x121   : > { %v2625_v13 = vpop.f32.mrb[34].mxu0  ;;  %2474 = vmatprep.subr.bf16.mxu0 %v1434_v18  ;;  %2661 = vmatprep.subr.bf16.mxu1 %v1434_v18  ;;  %v3345_v42 = vmul.f32 %v3255_v30, %v844_v17  ;;  %v3361_v30 = vpop.permute.xlu1 %1342 }
 0x122   : > { %v3342_v3 = vmul.f32 %v2625_v13, %v3272_v56  ;;  %v847_v47 = vpop.f32.mrb[35].mxu0 }
 0x123   : > { %v3348_v48 = vmul.f32 %v3260_v33, %v847_v47  ;;  %v2742_v47 = vld [vmem:[%s3030_s29 + $0xa4] ss:$16 sps:$4 sm:$0xff]  }
 0x124   : > { %v1436_v32 = vpack.c.bf16 %v3342_v3, %v3339_v15  ;;  %2475 = vmatpush3.bf16.msra.mxu0 %v3284_v6  ;;  %2669 = vmatpush3.bf16.msra.mxu1 %v3284_v6  ;;  %v3381_v31 = vpop.permute.xlu0 %1347 }
 0x125   : > { %v1435_v56 = vpack.c.bf16 %v3348_v48, %v3345_v42  ;;  %v1263_v54 = vpop.permute.xlu1 %1262  ;;  %v2748_v42 = vld [vmem:[%s3030_s29 + $0xe4] ss:$16 sps:$4 sm:$0xff]  }
 0x127   : > { %v2628_v33 = vpop.f32.mrb[36].mxu0  ;;  %1700 = vmatmul.mubr.bf16.vlgmr.msra.gmra.mrb[0].mxu1 %v2730_v51  ;;  %1692 = vmatmul.mubr.bf16.vlgmr.msra.gmra.mrb[64].mxu0 %v2751_v59 }
 0x128   : > { %v860_v60 = vpop.f32.mrb[37].mxu0  ;;  %1707 = vmatprep.mubr.bf16.mxu1 %v2733_v52  ;;  %v3364_v41 = vmul.f32 %v2628_v33, %v3298_v55  ;;  %v1268_v39 = vpop.permute.xlu0 %1267 }
 0x129   : > { %v2629_v37 = vpop.f32.mrb[38].mxu0  ;;  %v3370_v63 = vmul.f32 %v3282_v11, %v860_v60  ;;  %v3387_v28 = vpop.permute.xlu1 %1352 }
 0x12a   : > { %v3367_v6 = vmul.f32 %v2629_v37, %v3300_v45  ;;  %v863_v61 = vpop.f32.mrb[39].mxu0 }
 0x12b   : > { %v3373_v1 = vmul.f32 %v3286_v7, %v863_v61 }
 0x12c   : > { %v1438_v62 = vpack.c.bf16 %v3367_v6, %v3364_v41 }
 0x12d   : > { %v1437_v55 = vpack.c.bf16 %v3373_v1, %v3370_v63  ;;  %v2756_v63 = vld [vmem:[%s3030_s29 + $0xc] ss:$16 sps:$4 sm:$0xff]  }
 0x12f   : > { %v2632_v45 = vpop.f32.mrb[40].mxu0  ;;  %1708 = vmatmul.mubr.bf16.gmra.mrb[4].mxu1 %v2735_v34 }
 0x130   : > { %v876_v0 = vpop.f32.mrb[41].mxu0  ;;  %1715 = vmatprep.mubr.bf16.mxu1 %v2736_v53  ;;  %v3383_v7 = vmul.f32 %v2632_v45, %v1248_v16  ;;  %v2744_v53 = vld [vmem:[%s3030_s29 + $0xa0] ss:$16 sps:$4 sm:$0xff]   ;;  %v2745_v45 = vld [vmem:[%s3030_s29 + $0xc4] ss:$16 sps:$4 sm:$0xff]  }
 0x131   : > { %v2633_v11 = vpop.f32.mrb[42].mxu0  ;;  %v3390_v29 = vmul.f32 %v3318_v27, %v876_v0  ;;  %v1273_v27 = vpop.permute.xlu1 %1272 }
 0x132   : > { %v3385_v25 = vmul.f32 %v2633_v11, %v1253_v12  ;;  %v879_v26 = vpop.f32.mrb[43].mxu0  ;;  %v2741_v12 = vld [vmem:[%s3030_s29 + $0x80] ss:$16 sps:$4 sm:$0xff]  }
 0x133   : > { %v3393_v10 = vmul.f32 %v3322_v50, %v879_v26 }
 0x134   : > { %v1440_v4 = vpack.c.bf16 %v3385_v25, %v3383_v7  ;;  %v2760_v7 = vld [vmem:[%s3030_s29 + $0x4c] ss:$16 sps:$4 sm:$0xff]   ;;  %v2762_v25 = vld [vmem:[%s3030_s29 + $0x48] ss:$16 sps:$4 sm:$0xff]  }
 0x135   : > { %v1439_v49 = vpack.c.bf16 %v3393_v10, %v3390_v29  ;;  %v2765_v10 = vld [vmem:[%s3030_s29 + $0x68] ss:$16 sps:$4 sm:$0xff]  }
 0x137   : > { %v2636_v35 = vpop.f32.mrb[44].mxu0  ;;  %1716 = vmatmul.mubr.bf16.gmra.mrb[8].mxu1 %v2738_v8 }
 0x138   : > { %v892_v44 = vpop.f32.mrb[45].mxu0  ;;  %1723 = vmatprep.mubr.bf16.mxu1 %v2739_v9  ;;  %v3401_v57 = vmul.f32 %v2636_v35, %v1268_v39  ;;  %v2747_v35 = vld [vmem:[%s3030_s29 + $0xc0] ss:$16 sps:$4 sm:$0xff]  }
 0x139   : > { %v2637_v18 = vpop.f32.mrb[46].mxu0  ;;  %v3405_v16 = vmul.f32 %v1258_v24, %v892_v44  ;;  %v2750_v44 = vld [vmem:[%s3030_s29 + $0xe0] ss:$16 sps:$4 sm:$0xff]  }
 0x13a   : > { %v3403_v50 = vmul.f32 %v2637_v18, %v1273_v27  ;;  %v895_v19 = vpop.f32.mrb[47].mxu0 }
 0x13b   : > { %v3407_v17 = vmul.f32 %v1263_v54, %v895_v19  ;;  %v2772_v19 = vld [vmem:[%s3030_s29 + $0xcc] ss:$16 sps:$4 sm:$0xff]  }
 0x13c   : > { %v1442_v13 = vpack.c.bf16 %v3403_v50, %v3401_v57  ;;  %v2769_v57 = vld [vmem:[%s3030_s29 + $0xac] ss:$16 sps:$4 sm:$0xff]   ;;  %v2771_v50 = vld [vmem:[%s3030_s29 + $0xa8] ss:$16 sps:$4 sm:$0xff]  }
 0x13d   : > { %v1441_v51 = vpack.c.bf16 %v3407_v17, %v3405_v16  ;;  %v2774_v16 = vld [vmem:[%s3030_s29 + $0xc8] ss:$16 sps:$4 sm:$0xff]   ;;  %v2775_v17 = vld [vmem:[%s3030_s29 + $0xec] ss:$16 sps:$4 sm:$0xff]  }
 0x13f   : > { %v2640_v59 = vpop.f32.mrb[48].mxu0  ;;  %1724 = vmatmul.mubr.bf16.gmra.mrb[12].mxu1 %v2741_v12  ;;  %v2777_v12 = vld [vmem:[%s3030_s29 + $0xe8] ss:$16 sps:$4 sm:$0xff]  }
 0x140   : > { %v908_v52 = vpop.f32.mrb[49].mxu0  ;;  %1731 = vmatprep.mubr.bf16.mxu1 %v2742_v47  ;;  %v1405_v60 = vmul.f32 %v2640_v59, %v3262_v40 }
 0x141   : > { %v2641_v33 = vpop.f32.mrb[50].mxu0  ;;  %v1403_v34 = vmul.f32 %v3249_v20, %v908_v52 }
 0x142   : > { %v1406_v37 = vmul.f32 %v2641_v33, %v3264_v38  ;;  %v911_v61 = vpop.f32.mrb[51].mxu0 }
 0x143   : > { %v1404_v24 = vmul.f32 %v3251_v21, %v911_v61 }
 0x144   : > { %v1444_v54 = vpack.c.bf16 %v1406_v37, %v1405_v60 }
 0x145   : > { %v1443_v0 = vpack.c.bf16 %v1404_v24, %v1403_v34 }
 0x147   : > { %v2644_v11 = vpop.f32.mrb[52].mxu0  ;;  %2524 = vmatprep.subr.bf16.mxu1 %v1443_v0  ;;  %1732 = vmatmul.mubr.bf16.gmra.mrb[16].mxu1 %v2744_v53 }
 0x148   : > { %v924_v26 = vpop.f32.mrb[53].mxu0  ;;  %2525 = vmatpush3.bf16.msra.mxu1 %v1435_v56  ;;  %1739 = vmatprep.mubr.bf16.mxu1 %v2745_v45  ;;  %v1409_v20 = vmul.f32 %v2644_v11, %v3290_v43 }
 0x149   : > { %v2645_v40 = vpop.f32.mrb[54].mxu0  ;;  %2526 = vmatprep.subr.bf16.mxu1 %v1444_v54  ;;  %v1407_v8 = vmul.f32 %v3278_v58, %v924_v26 }
 0x14a   : > { %v1410_v21 = vmul.f32 %v2645_v40, %v3294_v14  ;;  %v927_v38 = vpop.f32.mrb[55].mxu0 }
 0x14b   : > { %v1408_v9 = vmul.f32 %v3280_v22, %v927_v38 }
 0x14c   : > { %v1446_v39 = vpack.c.bf16 %v1410_v21, %v1409_v20  ;;  %2527 = vmatpush3.bf16.msra.mxu1 %v1436_v32 }
 0x14d   : > { %v1445_v48 = vpack.c.bf16 %v1408_v9, %v1407_v8 }
 0x14f   : > { %v2648_v56 = vpop.f32.mrb[56].mxu0  ;;  %2528 = vmatprep.subr.bf16.mxu1 %v1445_v48  ;;  %1740 = vmatmul.mubr.bf16.gmra.mrb[20].mxu1 %v2747_v35 }
 0x150   : > { %v940_v43 = vpop.f32.mrb[57].mxu0  ;;  %2529 = vmatpush3.bf16.msra.mxu1 %v1437_v55  ;;  %1747 = vmatprep.mubr.bf16.mxu1 %v2748_v42  ;;  %v1413_v22 = vmul.f32 %v2648_v56, %v3326_v5 }
 0x151   : > { %v2649_v58 = vpop.f32.mrb[58].mxu0  ;;  %2530 = vmatprep.subr.bf16.mxu1 %v1446_v39  ;;  %v1411_v3 = vmul.f32 %v3308_v2, %v940_v43 }
 0x152   : > { %v1414_v14 = vmul.f32 %v2649_v58, %v3330_v36  ;;  %v943_v15 = vpop.f32.mrb[59].mxu0 }
 0x153   : > { %v1412_v32 = vmul.f32 %v3310_v23, %v943_v15 }
 0x154   : > { %v1448_v27 = vpack.c.bf16 %v1414_v14, %v1413_v22  ;;  %2531 = vmatpush3.bf16.msra.mxu1 %v1438_v62 }
 0x155   : > { %v1447_v1 = vpack.c.bf16 %v1412_v32, %v1411_v3 }
 0x157   : > { %v2652_v55 = vpop.f32.mrb[60].mxu0  ;;  %2532 = vmatprep.subr.bf16.mxu1 %v1447_v1  ;;  %1748 = vmatmul.mubr.bf16.gmra.mrb[24].mxu1 %v2750_v44 }
 0x158   : > { %v956_v18 = vpop.f32.mrb[61].mxu0  ;;  %2533 = vmatpush3.bf16.msra.mxu1 %v1439_v49  ;;  %1788 = vmatprep.mubr.bf16.mxu1 %v2756_v63  ;;  %v1417_v23 = vmul.f32 %v2652_v55, %v3381_v31  ;;  %v2754_v31 = vld [vmem:[%s3030_s29 + $0x8] ss:$16 sps:$4 sm:$0xff]  }
 0x159   : > { %v2653_v2 = vpop.f32.mrb[62].mxu0  ;;  %2534 = vmatprep.subr.bf16.mxu1 %v1448_v27  ;;  %v1415_v41 = vmul.f32 %v3359_v46, %v956_v18  ;;  %v2757_v46 = vld [vmem:[%s3030_s29 + $0x2c] ss:$16 sps:$4 sm:$0xff]   ;;  %v2768_v49 = vld [vmem:[%s3030_s29 + $0x88] ss:$16 sps:$4 sm:$0xff]  }
 0x15a   : > { %v1418_v5 = vmul.f32 %v2653_v2, %v3387_v28  ;;  %v959_v36 = vpop.f32.mrb[63].mxu0  ;;  %v2763_v28 = vld [vmem:[%s3030_s29 + $0x6c] ss:$16 sps:$4 sm:$0xff]  }
 0x15b   : > { %v1416_v6 = vmul.f32 %v3361_v30, %v959_v36  ;;  %v2759_v30 = vld [vmem:[%s3030_s29 + $0x28] ss:$16 sps:$4 sm:$0xff]  }
 0x15c   : > { %v1450_v62 = vpack.c.bf16 %v1418_v5, %v1417_v23  ;;  %2535 = vmatpush3.bf16.msra.mxu1 %v1440_v4  ;;  %v2766_v4 = vld [vmem:[%s3030_s29 + $0x8c] ss:$16 sps:$4 sm:$0xff]  }
 0x15d   : > { %v1449_v29 = vpack.c.bf16 %v1416_v6, %v1415_v41 }
 0x15f   : > { %2536 = vmatprep.subr.bf16.mxu1 %v1449_v29 }
 0x160   : > { %2537 = vmatpush3.bf16.msra.mxu1 %v1441_v51 }
 0x161   : > { %2538 = vmatprep.subr.bf16.mxu1 %v1450_v62 }
 0x164   : > { %2539 = vmatpush3.bf16.msra.mxu1 %v1442_v13 }
 0x167   : > { %1789 = vmatmul.mubr.bf16.vlgmr.msra.gmra.mrb[28].mxu1 %v2754_v31 }
 0x168   : > { %1796 = vmatprep.mubr.bf16.mxu1 %v2757_v46 }
 0x16f   : > { %1797 = vmatmul.mubr.bf16.gmra.mrb[32].mxu1 %v2759_v30 }
 0x170   : > { %1804 = vmatprep.mubr.bf16.mxu1 %v2760_v7 }
 0x177   : > { %1805 = vmatmul.mubr.bf16.gmra.mrb[36].mxu1 %v2762_v25 }
 0x178   : > { %1812 = vmatprep.mubr.bf16.mxu1 %v2763_v28 }
 0x17f   : > { %1813 = vmatmul.mubr.bf16.gmra.mrb[40].mxu1 %v2765_v10  ;;  %v1923_v10 = vpop.permute.xlu0 %1922 }
 0x180   : > { %1820 = vmatprep.mubr.bf16.mxu1 %v2766_v4  ;;  %v3507_v4 = vld [vmem:[%s3567_s5] ss:$0 sm:$0xff] }
 0x187   : > { %1821 = vmatmul.mubr.bf16.gmra.mrb[44].mxu1 %v2768_v49 }
 0x188   : > { %1828 = vmatprep.mubr.bf16.mxu1 %v2769_v57 }
 0x18f   : > { %1829 = vmatmul.mubr.bf16.gmra.mrb[48].mxu1 %v2771_v50  ;;  %v1928_v50 = vpop.permute.xlu1 %1927 }
 0x190   : > { %1836 = vmatprep.mubr.bf16.mxu1 %v2772_v19 }
 0x197   : > { %1837 = vmatmul.mubr.bf16.gmra.mrb[52].mxu1 %v2774_v16 }
 0x198   : > { %1844 = vmatprep.mubr.bf16.mxu1 %v2775_v17 }
 0x19f   : > { %1845 = vmatmul.mubr.bf16.gmra.mrb[56].mxu1 %v2777_v12 }
 0x1fa   : > { %v2482_v13 = vpop.f32.mrb[0].mxu1  ;;  %v2476_v47 = vpop.f32.mrb[64].mxu0 }
 0x1fb   : > { %v2483_v51 = vpop.f32.mrb[1].mxu1  ;;  %v2477_v59 = vpop.f32.mrb[65].mxu0 }
 0x1fc   : > { %v3476_v52 = vadd.f32 %v2483_v51, %v2482_v13  ;;  %v2485_v33 = vpop.f32.mrb[2].mxu1  ;;  %v2478_v60 = vadd.f32 %v2477_v59, %v2476_v47  ;;  %v2479_v37 = vpop.f32.mrb[66].mxu0 }
 0x1fd   : > { %v2486_v61 = vpop.f32.mrb[3].mxu1  ;;  %v2480_v34 = vpop.f32.mrb[67].mxu0 }
 0x1fe   : > { %v3478_v24 = vadd.f32 %v2486_v61, %v2485_v33  ;;  %v2481_v53 = vadd.f32 %v2480_v34, %v2479_v37  ;;  %v1933_v34 = vpop.permute.xlu0 %1932 }
 0x202   : > { %v2488_v54 = vpop.f32.mrb[4].mxu1 }
 0x203   : > { %v2489_v45 = vpop.f32.mrb[5].mxu1 }
 0x204   : > { %v3480_v0 = vadd.f32 %v2489_v45, %v2488_v54  ;;  %v2491_v11 = vpop.f32.mrb[6].mxu1 }
 0x205   : > { %v2492_v26 = vpop.f32.mrb[7].mxu1 }
 0x206   : > { %v3482_v40 = vadd.f32 %v2492_v26, %v2491_v11  ;;  %v1938_v11 = vpop.permute.xlu1 %1937 }
 0x20a   : > { %v2494_v20 = vpop.f32.mrb[8].mxu1 }
 0x20b   : > { %v2495_v21 = vpop.f32.mrb[9].mxu1 }
 0x20c   : > { %v3484_v38 = vadd.f32 %v2495_v21, %v2494_v20  ;;  %v2497_v8 = vpop.f32.mrb[10].mxu1 }
 0x20d   : > { %v2498_v9 = vpop.f32.mrb[11].mxu1 }
 0x20e   : > { %v3486_v35 = vadd.f32 %v2498_v9, %v2497_v8 }
 0x212   : > { %v2500_v39 = vpop.f32.mrb[12].mxu1 }
 0x213   : > { %v2501_v42 = vpop.f32.mrb[13].mxu1 }
 0x214   : > { %v3488_v48 = vadd.f32 %v2501_v42, %v2500_v39  ;;  %v2503_v56 = vpop.f32.mrb[14].mxu1 }
 0x215   : > { %v2504_v43 = vpop.f32.mrb[15].mxu1 }
 0x216   : > { %v3490_v58 = vadd.f32 %v2504_v43, %v2503_v56 }
 0x21a   : > { %v2506_v22 = vpop.f32.mrb[16].mxu1 }
 0x21b   : > { %v2507_v14 = vpop.f32.mrb[17].mxu1 }
 0x21c   : > { %v3492_v15 = vadd.f32 %v2507_v14, %v2506_v22  ;;  %v2509_v3 = vpop.f32.mrb[18].mxu1 }
 0x21d   : > { %v2510_v32 = vpop.f32.mrb[19].mxu1 }
 0x21e   : > { %v3494_v44 = vadd.f32 %v2510_v32, %v2509_v3  ;;  %v1943_v3 = vpop.permute.xlu0 %1942 }
 0x222   : > { %v2512_v27 = vpop.f32.mrb[20].mxu1 }
 0x223   : > { %v2513_v63 = vpop.f32.mrb[21].mxu1 }
 0x224   : > { %v3496_v1 = vadd.f32 %v2513_v63, %v2512_v27  ;;  %v2515_v55 = vpop.f32.mrb[22].mxu1  ;;  %v1948_v63 = vpop.permute.xlu1 %1947 }
 0x225   : > { %v2516_v18 = vpop.f32.mrb[23].mxu1 }
 0x226   : > { %v3498_v2 = vadd.f32 %v2516_v18, %v2515_v55 }
 0x22a   : > { %v2518_v23 = vpop.f32.mrb[24].mxu1 }
 0x22b   : > { %v2519_v5 = vpop.f32.mrb[25].mxu1 }
 0x22c   : > { %v3500_v36 = vadd.f32 %v2519_v5, %v2518_v23  ;;  %v2521_v41 = vpop.f32.mrb[26].mxu1 }
 0x22d   : > { %v2522_v6 = vpop.f32.mrb[27].mxu1 }
 0x22e   : > { %v3502_v62 = vadd.f32 %v2522_v6, %v2521_v41 }
 0x23a   : > { %v2540_v29 = vpop.f32.mrb[28].mxu1 }
 0x23b   : > { %v2541_v31 = vpop.f32.mrb[29].mxu1 }
 0x23c   : > { %v2542_v46 = vadd.f32 %v2541_v31, %v2540_v29  ;;  %v2543_v30 = vpop.f32.mrb[30].mxu1 }
 0x23d   : > { %v2544_v7 = vpop.f32.mrb[31].mxu1 }
 0x23e   : > { %v1791_v25 = vadd.f32 %v2542_v46, %v2478_v60  ;;  %v2545_v28 = vadd.f32 %v2544_v7, %v2543_v30 }
 0x240   : > { %v2000_v49 = vmul.f32 %v1923_v10, %v1791_v25  ;;  %v1794_v57 = vadd.f32 %v2545_v28, %v2481_v53  ;;  %v1953_v25 = vpop.permute.xlu0 %1952 }
 0x242   : > { %v2023_v19 = vadd.f32 %v3507_v4, %v2000_v49  ;;  %v2001_v16 = vmul.f32 %v1928_v50, %v1794_v57  ;;  %v2546_v17 = vpop.f32.mrb[32].mxu1  ;;  %v1958_v49 = vpop.permute.xlu1 %1957 }
 0x243   : > { %v2547_v12 = vpop.f32.mrb[33].mxu1 }
 0x244   : > { %v2024_v13 = vadd.f32 %v3507_v4, %v2001_v16  ;;  %v2548_v47 = vadd.f32 %v2547_v12, %v2546_v17  ;;  %v2549_v51 = vpop.f32.mrb[34].mxu1  ;;  %v2039_v33 = vmax.f32 %v2023_v19, 0.0 }
 0x245   : > { %v2550_v59 = vpop.f32.mrb[35].mxu1 }
 0x246   : > { %v2040_v60 = vmax.f32 %v2024_v13, 0.0  ;;  %v1799_v37 = vadd.f32 %v2548_v47, %v3476_v52  ;;  %v2551_v61 = vadd.f32 %v2550_v59, %v2549_v51 }
 0x248   : > { %v2383_v53 = vpack.c.bf16 %v2040_v60, %v2039_v33  ;;  %v2002_v54 = vmul.f32 %v1933_v34, %v1799_v37  ;;  %v1802_v45 = vadd.f32 %v2551_v61, %v3478_v24  ;;  %v1963_v60 = vpop.permute.xlu0 %1962  ;;  %v1968_v34 = vpop.permute.xlu1 %1967 }
 0x24a   : > { %2384 = vst [vmem:[%s3516_s12] sm:$0xff] %v2383_v53   ;;  %v2025_v26 = vadd.f32 %v3507_v4, %v2002_v54  ;;  %v2003_v20 = vmul.f32 %v1938_v11, %v1802_v45  ;;  %v2552_v21 = vpop.f32.mrb[36].mxu1 }
 0x24b   : > { %v2553_v52 = vpop.f32.mrb[37].mxu1 }
 0x24c   : > { %v2026_v8 = vadd.f32 %v3507_v4, %v2003_v20  ;;  %v2554_v9 = vadd.f32 %v2553_v52, %v2552_v21  ;;  %v2555_v39 = vpop.f32.mrb[38].mxu1  ;;  %v2041_v56 = vmax.f32 %v2025_v26, 0.0 }
 0x24d   : > { %v2556_v42 = vpop.f32.mrb[39].mxu1 }
 0x24e   : > { %v2042_v43 = vmax.f32 %v2026_v8, 0.0  ;;  %v1807_v22 = vadd.f32 %v2554_v9, %v3480_v0  ;;  %v2557_v14 = vadd.f32 %v2556_v42, %v2555_v39  ;;  %v1973_v42 = vpop.permute.xlu0 %1972 }
 0x250   : > { %v2388_v24 = vpack.c.bf16 %v2042_v43, %v2041_v56  ;;  %v2004_v32 = vmul.f32 %v1943_v3, %v1807_v22  ;;  %v1810_v27 = vadd.f32 %v2557_v14, %v3482_v40  ;;  %v1978_v22 = vpop.permute.xlu1 %1977 }
 0x252   : > { %2420 = vst [vmem:[%s3516_s12 + $0x8] sm:$0xff] %v2388_v24   ;;  %v2027_v55 = vadd.f32 %v3507_v4, %v2004_v32  ;;  %v2005_v18 = vmul.f32 %v1948_v63, %v1810_v27  ;;  %v2558_v23 = vpop.f32.mrb[40].mxu1 }
 0x253   : > { %v2559_v5 = vpop.f32.mrb[41].mxu1 }
 0x254   : > { %v2028_v41 = vadd.f32 %v3507_v4, %v2005_v18  ;;  %v2560_v6 = vadd.f32 %v2559_v5, %v2558_v23  ;;  %v2561_v29 = vpop.f32.mrb[42].mxu1  ;;  %v2043_v0 = vmax.f32 %v2027_v55, 0.0 }
 0x255   : > { %v2562_v31 = vpop.f32.mrb[43].mxu1 }
 0x256   : > { %v2044_v46 = vmax.f32 %v2028_v41, 0.0  ;;  %v1815_v30 = vadd.f32 %v2560_v6, %v3484_v38  ;;  %v2563_v7 = vadd.f32 %v2562_v31, %v2561_v29  ;;  %v1983_v6 = vpop.permute.xlu0 %1982 }
 0x258   : > { %v2393_v40 = vpack.c.bf16 %v2044_v46, %v2043_v0  ;;  %v2006_v28 = vmul.f32 %v1953_v25, %v1815_v30  ;;  %v1818_v10 = vadd.f32 %v2563_v7, %v3486_v35  ;;  %v1988_v0 = vpop.permute.xlu1 %1987 }
 0x25a   : > { %2421 = vst [vmem:[%s3516_s12 + $0x10] sm:$0xff] %v2393_v40   ;;  %v2029_v57 = vadd.f32 %v3507_v4, %v2006_v28  ;;  %v2007_v50 = vmul.f32 %v1958_v49, %v1818_v10  ;;  %v2564_v19 = vpop.f32.mrb[44].mxu1 }
 0x25b   : > { %v2565_v16 = vpop.f32.mrb[45].mxu1 }
 0x25c   : > { %v2030_v17 = vadd.f32 %v3507_v4, %v2007_v50  ;;  %v2566_v12 = vadd.f32 %v2565_v16, %v2564_v19  ;;  %v2567_v13 = vpop.f32.mrb[46].mxu1  ;;  %v2045_v38 = vmax.f32 %v2029_v57, 0.0 }
 0x25d   : > { %v2568_v47 = vpop.f32.mrb[47].mxu1 }
 0x25e   : > { %v2046_v51 = vmax.f32 %v2030_v17, 0.0  ;;  %v1823_v59 = vadd.f32 %v2566_v12, %v3488_v48  ;;  %v2569_v33 = vadd.f32 %v2568_v47, %v2567_v13  ;;  %v1998_v13 = vpop.permute.xlu1 %1997 }
 0x260   : > { %v2398_v35 = vpack.c.bf16 %v2046_v51, %v2045_v38  ;;  %v2008_v37 = vmul.f32 %v1963_v60, %v1823_v59  ;;  %v1826_v61 = vadd.f32 %v2569_v33, %v3490_v58 }
 0x262   : > { %2422 = vst [vmem:[%s3516_s12 + $0x18] sm:$0xff] %v2398_v35   ;;  %v2031_v53 = vadd.f32 %v3507_v4, %v2008_v37  ;;  %v2009_v54 = vmul.f32 %v1968_v34, %v1826_v61  ;;  %v2570_v45 = vpop.f32.mrb[48].mxu1 }
 0x263   : > { %v2571_v11 = vpop.f32.mrb[49].mxu1 }
 0x264   : > { %v2032_v26 = vadd.f32 %v3507_v4, %v2009_v54  ;;  %v2572_v20 = vadd.f32 %v2571_v11, %v2570_v45  ;;  %v2573_v21 = vpop.f32.mrb[50].mxu1  ;;  %v2047_v48 = vmax.f32 %v2031_v53, 0.0 }
 0x265   : > { %v2574_v52 = vpop.f32.mrb[51].mxu1 }
 0x266   : > { %v2048_v8 = vmax.f32 %v2032_v26, 0.0  ;;  %v1831_v9 = vadd.f32 %v2572_v20, %v3492_v15  ;;  %v2575_v39 = vadd.f32 %v2574_v52, %v2573_v21 }
 0x268   : > { %v2403_v58 = vpack.c.bf16 %v2048_v8, %v2047_v48  ;;  %v2010_v56 = vmul.f32 %v1973_v42, %v1831_v9  ;;  %v1834_v43 = vadd.f32 %v2575_v39, %v3494_v44 }
 0x26a   : > { %2423 = vst [vmem:[%s3516_s12 + $0x20] sm:$0xff] %v2403_v58   ;;  %v2033_v14 = vadd.f32 %v3507_v4, %v2010_v56  ;;  %v2011_v3 = vmul.f32 %v1978_v22, %v1834_v43  ;;  %v2576_v24 = vpop.f32.mrb[52].mxu1 }
 0x26b   : > { %v2577_v32 = vpop.f32.mrb[53].mxu1 }
 0x26c   : > { %v2034_v27 = vadd.f32 %v3507_v4, %v2011_v3  ;;  %v2578_v63 = vadd.f32 %v2577_v32, %v2576_v24  ;;  %v2579_v55 = vpop.f32.mrb[54].mxu1  ;;  %v2049_v15 = vmax.f32 %v2033_v14, 0.0 }
 0x26d   : > { %v2580_v18 = vpop.f32.mrb[55].mxu1 }
 0x26e   : > { %v2050_v23 = vmax.f32 %v2034_v27, 0.0  ;;  %v1839_v5 = vadd.f32 %v2578_v63, %v3496_v1  ;;  %v2581_v41 = vadd.f32 %v2580_v18, %v2579_v55 }
 0x270   : > { %v2408_v44 = vpack.c.bf16 %v2050_v23, %v2049_v15  ;;  %v2012_v29 = vmul.f32 %v1983_v6, %v1839_v5  ;;  %v1842_v31 = vadd.f32 %v2581_v41, %v3498_v2  ;;  %v1993_v2 = vpop.permute.xlu0 %1992 }
 0x272   : > { %2424 = vst [vmem:[%s3516_s12 + $0x28] sm:$0xff] %v2408_v44   ;;  %v2035_v46 = vadd.f32 %v3507_v4, %v2012_v29  ;;  %v2013_v30 = vmul.f32 %v1988_v0, %v1842_v31  ;;  %v2582_v7 = vpop.f32.mrb[56].mxu1 }
 0x273   : > { %v2583_v25 = vpop.f32.mrb[57].mxu1 }
 0x274   : > { %v2036_v40 = vadd.f32 %v3507_v4, %v2013_v30  ;;  %v2584_v28 = vadd.f32 %v2583_v25, %v2582_v7  ;;  %v2585_v10 = vpop.f32.mrb[58].mxu1  ;;  %v2051_v1 = vmax.f32 %v2035_v46, 0.0 }
 0x275   : > { %v2586_v49 = vpop.f32.mrb[59].mxu1 }
 0x276   : > { %v2052_v57 = vmax.f32 %v2036_v40, 0.0  ;;  %v1847_v50 = vadd.f32 %v2584_v28, %v3500_v36  ;;  %v2587_v19 = vadd.f32 %v2586_v49, %v2585_v10 }
 0x278   : > { %v2413_v16 = vpack.c.bf16 %v2052_v57, %v2051_v1  ;;  %v2014_v17 = vmul.f32 %v1993_v2, %v1847_v50  ;;  %v1850_v12 = vadd.f32 %v2587_v19, %v3502_v62 }
 0x27a   : > { %2425 = vst [vmem:[%s3516_s12 + $0x30] sm:$0xff] %v2413_v16   ;;  %v2037_v47 = vadd.f32 %v3507_v4, %v2014_v17  ;;  %v2015_v38 = vmul.f32 %v1998_v13, %v1850_v12 }
 0x27c   : > { %v2038_v51 = vadd.f32 %v3507_v4, %v2015_v38  ;;  %v2053_v59 = vmax.f32 %v2037_v47, 0.0 }
 0x27e   : > { %v2054_v33 = vmax.f32 %v2038_v51, 0.0 }
 0x280   : > { %v2418_v60 = vpack.c.bf16 %v2054_v33, %v2053_v59 }
 0x282   : > { %2426 = vst [vmem:[%s3516_s12 + $0x38] sm:$0xff] %v2418_v60  }
 0x283 PF: > { %s16_s23 = sadd.s32 1, %s2800_s23   ;;  %s3569_s21 = smov %s2796_s22 }
 0x284   : > { %p13_p5 = scmp.ge.s32.totalorder %s16_s23, 6   ;;  %s3570_s22 = smov %s3572_s24 }
 0x286   :  { %15 = sbr.rel (!%p13_p5) target bundleno = 2 (0x2), region = 89 }

// kernel: gcn_encoder.3
= control target key start
LH: loop header
LB: loop body
LE: loop exit
PB: predicated region body
PF: predicated region fallthrough
CT: control target
= control target key end

     0   :  { %s2662_s21 = smov 0   ;;  %s2664_s22 = smov 0   ;;  %s3403_s0 = inlined_call_operand.vmem [shape: bf16[512,512], index: 0, kind: input, shape index: {}]   ;;  %s3404_s1 = inlined_call_operand.vmem [shape: bf16[512,128], index: 1, kind: input, shape index: {}]   ;;  %s3405_s2 = inlined_call_operand.vmem [shape: bf16[128,128], index: 2, kind: input, shape index: {}]   ;;  %s3406_s3 = inlined_call_operand.vmem [shape: f32[512,1], index: 3, kind: input, shape index: {}, may-alias: {3,4}]   ;;  %s3407_s4 = inlined_call_operand.vmem [shape: f32[512,1], index: 4, kind: input, shape index: {}, may-alias: {3,4}]   ;;  %s3408_s5 = inlined_call_operand.vmem [shape: f32[1,128], index: 5, kind: input, shape index: {}]   ;;  %s3409_s6 = inlined_call_operand.vmem [shape: f32[512,128], index: 6, kind: output, shape index: {}]  }
   0x1   :  { %s2666_s23 = smov 0  }
   0x2 LB: > { %s28_s24 = sadd.s32 1, %s2620_s22  ;;  %p2154_p0 = scmp.ge.s32.totalorder %s2624_s23, 1  ;;  %s2624_s23 = sphi %s2666_s23, %s16_s23   ;;  %s2620_s22 = sphi %s2664_s22, %s3411_s22   ;;  %s2616_s21 = sphi %s2662_s21, %s3410_s21  }
   0x3   : > { %p30_p1 = scmp.ge.s32.totalorder %s28_s24, 4  ;;  %p255_p2 = scmp.lt.s32.totalorder %s2624_s23, 5 }
   0x5   : > { %s3413_s24 = smov (%p30_p1, %s28_s24), 0  ;;  %p256_p3 = pnand %p2154_p0, %p255_p2 }
   0x6   : > { %v981_v0 = vld [vmem:[%s3406_s3 + $0x80] sm:$0xff] (!%p256_p3)  ;;  %v2626_v2 = vmov (!%p256_p3), 0   ;;  %v982_v4 = vld [vmem:[%s3406_s3 + $0x88] sm:$0xff] (!%p256_p3)  ;;  %v2516_v7 = vld [vmem:[%s3405_s2 + $0x10] sm:$0xff] (!%p256_p3)   ;;  %s2155_s7 = sshll.u32 (!%p256_p3), %s2616_s21, 4 }
   0x7   : > { %259 = sbr.rel (%p256_p3) target bundleno = 668 (0x29c), region = 44  ;;  %v965_v1 = vld [vmem:[%s3406_s3] sm:$0xff] (!%p256_p3)  ;;  %2513 = vset.pattern.permute.xlu1 (!%p256_p3), %v2626_v2  ;;  %2512 = vset.pattern.permute.xlu0 (!%p256_p3), %v2626_v2  ;;  %v966_v5 = vld [vmem:[%s3406_s3 + $0x8] sm:$0xff] (!%p256_p3)  ;;  %v983_v8 = vld [vmem:[%s3406_s3 + $0x90] sm:$0xff] (!%p256_p3)  ;;  %p302_p4 = scmp.lt.s32.totalorder (!%p256_p3), %s2155_s7, 63 }
   0x8   : > { %v2514_v3 = vld [vmem:[%s3405_s2] sm:$0xff] (!%p256_p3)   ;;  %1111 = vperm.xlu0 (!%p256_p3), %2512, %v981_v0   ;;  %1031 = vperm.xlu1 (!%p256_p3), %2513, %v965_v1   ;;  %v2515_v6 = vld [vmem:[%s3405_s2 + $0x8] sm:$0xff] (!%p256_p3)   ;;  %v984_v9 = vld [vmem:[%s3406_s3 + $0x98] sm:$0xff] (!%p256_p3) }
   0x9   : > { %2406 = vmatprep.subr.bf16.mxu0 (!%p256_p3), %v2514_v3  ;;  %v2517_v10 = vld [vmem:[%s3405_s2 + $0x18] sm:$0xff] (!%p256_p3)   ;;  %v967_v11 = vld [vmem:[%s3406_s3 + $0x10] sm:$0xff] (!%p256_p3)  ;;  %v985_v13 = vld [vmem:[%s3406_s3 + $0xa0] sm:$0xff] (!%p256_p3) }
   0xa   : > { %2407 = vmatpush3.bf16.msra.mxu0 (!%p256_p3), %v2514_v3  ;;  %v968_v12 = vld [vmem:[%s3406_s3 + $0x18] sm:$0xff] (!%p256_p3)  ;;  %v2518_v14 = vld [vmem:[%s3405_s2 + $0x20] sm:$0xff] (!%p256_p3)   ;;  %v986_v16 = vld [vmem:[%s3406_s3 + $0xa8] sm:$0xff] (!%p256_p3) }
   0xb   : > { %2408 = vmatprep.subr.bf16.mxu0 (!%p256_p3), %v2515_v6  ;;  %v2522_v15 = vld [vmem:[%s3404_s1] sm:$0xff] (!%p256_p3)   ;;  %v2519_v17 = vld [vmem:[%s3405_s2 + $0x28] sm:$0xff] (!%p256_p3)   ;;  %v2520_v20 = vld [vmem:[%s3405_s2 + $0x30] sm:$0xff] (!%p256_p3)  }
   0xc   : > { %1116 = vperm.xlu0 (!%p256_p3), %2512, %v982_v4   ;;  %1036 = vperm.xlu1 (!%p256_p3), %2513, %v966_v5   ;;  %v969_v18 = vld [vmem:[%s3406_s3 + $0x20] sm:$0xff] (!%p256_p3)  ;;  %v970_v19 = vld [vmem:[%s3406_s3 + $0x28] sm:$0xff] (!%p256_p3)  ;;  %v987_v21 = vld [vmem:[%s3406_s3 + $0xb0] sm:$0xff] (!%p256_p3) }
   0xd   : > { %2422 = vmatprep.mubr.bf16.mxu0 (!%p256_p3), %v2522_v15  ;;  %v988_v22 = vld [vmem:[%s3406_s3 + $0xb8] sm:$0xff] (!%p256_p3)  ;;  %v971_v24 = vld [vmem:[%s3406_s3 + $0x30] sm:$0xff] (!%p256_p3)  ;;  %v989_v26 = vld [vmem:[%s3406_s3 + $0xc0] sm:$0xff] (!%p256_p3) }
   0xe   : > { %2409 = vmatpush3.bf16.msra.mxu0 %v2515_v6  ;;  %v2521_v23 = vld [vmem:[%s3405_s2 + $0x38] sm:$0xff]   ;;  %v990_v27 = vld [vmem:[%s3406_s3 + $0xc8] sm:$0xff]  ;;  %v2524_v29 = vld [vmem:[%s3404_s1 + $0x10] sm:$0xff]   ;;  %s3415_s7 = smov (!%p302_p4, %s2155_s7), 63 }
   0xf   : > { %2410 = vmatprep.subr.bf16.mxu0 %v2516_v7  ;;  %v972_v25 = vld [vmem:[%s3406_s3 + $0x38] sm:$0xff]  ;;  %v2523_v28 = vld [vmem:[%s3404_s1 + $0x8] sm:$0xff]   ;;  %v973_v30 = vld [vmem:[%s3406_s3 + $0x40] sm:$0xff]  ;;  %s2237_s27 = sshll.u32 %s3415_s7, 4  ;;  %s2159_s19 = sshll.u32 %s3415_s7, 3 }
  0x10   : > { %1121 = vperm.xlu0 %2512, %v983_v8   ;;  %1126 = vperm.xlu1 %2513, %v984_v9   ;;  %v974_v31 = vld [vmem:[%s3406_s3 + $0x48] sm:$0xff]  ;;  %v991_v32 = vld [vmem:[%s3406_s3 + $0xd0] sm:$0xff]  ;;  %v992_v33 = vld [vmem:[%s3406_s3 + $0xd8] sm:$0xff]  ;;  %s2848_s11 = scalar_lea.vmem %s3403_s0, %s2237_s27  ;;  %s2988_s30 = scalar_lea.vmem %s3407_s4, %s2159_s19 }
  0x11   : > { %v2525_v34 = vld [vmem:[%s3404_s1 + $0x18] sm:$0xff]   ;;  %v2526_v35 = vld [vmem:[%s3404_s1 + $0x20] sm:$0xff]   ;;  %v975_v36 = vld [vmem:[%s3406_s3 + $0x50] sm:$0xff] }
  0x12   : > { %2411 = vmatpush3.bf16.msra.mxu0 %v2516_v7  ;;  %v976_v37 = vld [vmem:[%s3406_s3 + $0x58] sm:$0xff]  ;;  %v993_v38 = vld [vmem:[%s3406_s3 + $0xe0] sm:$0xff]  ;;  %v994_v39 = vld [vmem:[%s3406_s3 + $0xe8] sm:$0xff] }
  0x13   : > { %2412 = vmatprep.subr.bf16.mxu0 %v2517_v10  ;;  %v2527_v40 = vld [vmem:[%s3404_s1 + $0x28] sm:$0xff]   ;;  %v2528_v41 = vld [vmem:[%s3404_s1 + $0x30] sm:$0xff]   ;;  %v977_v42 = vld [vmem:[%s3406_s3 + $0x60] sm:$0xff] }
  0x14   : > { %1041 = vperm.xlu0 %2512, %v967_v11   ;;  %1046 = vperm.xlu1 %2513, %v968_v12   ;;  %v978_v43 = vld [vmem:[%s3406_s3 + $0x68] sm:$0xff]  ;;  %v995_v44 = vld [vmem:[%s3406_s3 + $0xf0] sm:$0xff]  ;;  %v996_v45 = vld [vmem:[%s3406_s3 + $0xf8] sm:$0xff] }
  0x15   : > { %v2529_v46 = vld [vmem:[%s3404_s1 + $0x38] sm:$0xff]   ;;  %v2530_v47 = vld [vmem:[%s3404_s1 + $0x40] sm:$0xff]   ;;  %v979_v48 = vld [vmem:[%s3406_s3 + $0x70] sm:$0xff] }
  0x16   : > { %2413 = vmatpush3.bf16.msra.mxu0 %v2517_v10  ;;  %v980_v49 = vld [vmem:[%s3406_s3 + $0x78] sm:$0xff]  ;;  %v1013_v50 = vld [vmem:[%s3406_s3 + $0x180] sm:$0xff]  ;;  %v1014_v51 = vld [vmem:[%s3406_s3 + $0x188] sm:$0xff] }
  0x17   : > { %2414 = vmatprep.subr.bf16.mxu0 %v2518_v14  ;;  %v2531_v52 = vld [vmem:[%s3404_s1 + $0x48] sm:$0xff]   ;;  %v2532_v53 = vld [vmem:[%s3404_s1 + $0x50] sm:$0xff]   ;;  %v997_v54 = vld [vmem:[%s3406_s3 + $0x100] sm:$0xff] }
  0x18   : > { %1131 = vperm.xlu0 %2512, %v985_v13   ;;  %1136 = vperm.xlu1 %2513, %v986_v16   ;;  %v998_v55 = vld [vmem:[%s3406_s3 + $0x108] sm:$0xff]  ;;  %v1015_v56 = vld [vmem:[%s3406_s3 + $0x190] sm:$0xff]  ;;  %v1016_v57 = vld [vmem:[%s3406_s3 + $0x198] sm:$0xff] }
  0x19   : > { %v2533_v58 = vld [vmem:[%s3404_s1 + $0x58] sm:$0xff]   ;;  %v2534_v59 = vld [vmem:[%s3404_s1 + $0x60] sm:$0xff]   ;;  %v999_v60 = vld [vmem:[%s3406_s3 + $0x110] sm:$0xff] }
  0x1a   : > { %2415 = vmatpush3.bf16.msra.mxu0 %v2518_v14  ;;  %v1000_v61 = vld [vmem:[%s3406_s3 + $0x118] sm:$0xff]  ;;  %v1017_v62 = vld [vmem:[%s3406_s3 + $0x1a0] sm:$0xff]  ;;  %v1018_v63 = vld [vmem:[%s3406_s3 + $0x1a8] sm:$0xff] }
  0x1b   : > { %2416 = vmatprep.subr.bf16.mxu0 %v2519_v17  ;;  %v2535_v0 = vld [vmem:[%s3404_s1 + $0x68] sm:$0xff]   ;;  %v2536_v1 = vld [vmem:[%s3404_s1 + $0x70] sm:$0xff]   ;;  %v1001_v2 = vld [vmem:[%s3406_s3 + $0x120] sm:$0xff] }
  0x1c   : > { %1051 = vperm.xlu0 %2512, %v969_v18   ;;  %1056 = vperm.xlu1 %2513, %v970_v19   ;;  %v1002_v3 = vld [vmem:[%s3406_s3 + $0x128] sm:$0xff]  ;;  %v1019_v4 = vld [vmem:[%s3406_s3 + $0x1b0] sm:$0xff]  ;;  %v1020_v5 = vld [vmem:[%s3406_s3 + $0x1b8] sm:$0xff] }
  0x1d   : > { %v2537_v6 = vld [vmem:[%s3404_s1 + $0x78] sm:$0xff]   ;;  %v2538_v7 = vld [vmem:[%s3404_s1 + $0x80] sm:$0xff]   ;;  %v1003_v8 = vld [vmem:[%s3406_s3 + $0x130] sm:$0xff] }
  0x1e   : > { %2417 = vmatpush3.bf16.msra.mxu0 %v2519_v17  ;;  %v1004_v9 = vld [vmem:[%s3406_s3 + $0x138] sm:$0xff]  ;;  %v1021_v10 = vld [vmem:[%s3406_s3 + $0x1c0] sm:$0xff]  ;;  %v1022_v11 = vld [vmem:[%s3406_s3 + $0x1c8] sm:$0xff] }
  0x1f   : > { %2418 = vmatprep.subr.bf16.mxu0 %v2520_v20  ;;  %v2539_v12 = vld [vmem:[%s3404_s1 + $0x88] sm:$0xff]   ;;  %v2540_v13 = vld [vmem:[%s3404_s1 + $0x90] sm:$0xff]   ;;  %v1005_v14 = vld [vmem:[%s3406_s3 + $0x140] sm:$0xff] }
  0x20   : > { %1141 = vperm.xlu0 %2512, %v987_v21   ;;  %1146 = vperm.xlu1 %2513, %v988_v22   ;;  %v1006_v15 = vld [vmem:[%s3406_s3 + $0x148] sm:$0xff]  ;;  %v1023_v16 = vld [vmem:[%s3406_s3 + $0x1d0] sm:$0xff]  ;;  %v1024_v17 = vld [vmem:[%s3406_s3 + $0x1d8] sm:$0xff] }
  0x21   : > { %v2541_v18 = vld [vmem:[%s3404_s1 + $0x98] sm:$0xff]   ;;  %v2542_v19 = vld [vmem:[%s3404_s1 + $0xa0] sm:$0xff]  }
  0x22   : > { %2419 = vmatpush3.bf16.msra.mxu0 %v2520_v20  ;;  %v1007_v20 = vld [vmem:[%s3406_s3 + $0x150] sm:$0xff]  ;;  %v1008_v21 = vld [vmem:[%s3406_s3 + $0x158] sm:$0xff]  ;;  %v1025_v22 = vld [vmem:[%s3406_s3 + $0x1e0] sm:$0xff] }
  0x23   : > { %2420 = vmatprep.subr.bf16.mxu0 %v2521_v23 }
  0x24   : > { %1061 = vperm.xlu0 %2512, %v971_v24   ;;  %1066 = vperm.xlu1 %2513, %v972_v25   ;;  %v2543_v24 = vld [vmem:[%s3404_s1 + $0xa8] sm:$0xff]   ;;  %v2544_v25 = vld [vmem:[%s3404_s1 + $0xb0] sm:$0xff]  }
  0x26   : > { %2421 = vmatpush3.bf16.msra.mxu0 %v2521_v23  ;;  %v1026_v23 = vld [vmem:[%s3406_s3 + $0x1e8] sm:$0xff] }
  0x28   : > { %1151 = vperm.xlu0 %2512, %v989_v26   ;;  %1156 = vperm.xlu1 %2513, %v990_v27   ;;  %v1009_v26 = vld [vmem:[%s3406_s3 + $0x160] sm:$0xff]  ;;  %v1010_v27 = vld [vmem:[%s3406_s3 + $0x168] sm:$0xff] }
  0x29   : > { %2423 = vmatmul.mubr.bf16.vlgmr.msra.gmra.mrb[0].mxu0 %v2523_v28  ;;  %v1027_v28 = vld [vmem:[%s3406_s3 + $0x1f0] sm:$0xff] }
  0x2a   : > { %2426 = vmatprep.mubr.bf16.mxu0 %v2524_v29  ;;  %v1028_v29 = vld [vmem:[%s3406_s3 + $0x1f8] sm:$0xff] }
  0x2c   : > { %1071 = vperm.xlu0 %2512, %v973_v30   ;;  %1076 = vperm.xlu1 %2513, %v974_v31   ;;  %v2545_v30 = vld [vmem:[%s3404_s1 + $0xb8] sm:$0xff]   ;;  %v2546_v31 = vld [vmem:[%s3404_s1 + $0xc0] sm:$0xff]  }
  0x30   : > { %1161 = vperm.xlu0 %2512, %v991_v32   ;;  %1166 = vperm.xlu1 %2513, %v992_v33   ;;  %v1011_v32 = vld [vmem:[%s3406_s3 + $0x170] sm:$0xff]  ;;  %v1012_v33 = vld [vmem:[%s3406_s3 + $0x178] sm:$0xff] }
  0x31   : > { %2427 = vmatmul.mubr.bf16.gmra.mrb[4].mxu0 %v2525_v34  ;;  %v1883_v34 = vld [vmem:[%s2988_s30 + $0x8] sm:$0xff] }
  0x32   : > { %2430 = vmatprep.mubr.bf16.mxu0 %v2526_v35  ;;  %v1882_v35 = vld [vmem:[%s2988_s30] sm:$0xff] }
  0x34   : > { %1081 = vperm.xlu0 %2512, %v975_v36   ;;  %1086 = vperm.xlu1 %2513, %v976_v37   ;;  %v2547_v36 = vld [vmem:[%s3404_s1 + $0xc8] sm:$0xff]   ;;  %v2548_v37 = vld [vmem:[%s3404_s1 + $0xd0] sm:$0xff]  }
  0x38   : > { %1171 = vperm.xlu0 %2512, %v993_v38   ;;  %1176 = vperm.xlu1 %2513, %v994_v39   ;;  %v1885_v38 = vld [vmem:[%s2988_s30 + $0x18] sm:$0xff]  ;;  %v1884_v39 = vld [vmem:[%s2988_s30 + $0x10] sm:$0xff] }
  0x39   : > { %2431 = vmatmul.mubr.bf16.gmra.mrb[8].mxu0 %v2527_v40  ;;  %v1887_v40 = vld [vmem:[%s2988_s30 + $0x28] sm:$0xff] }
  0x3a   : > { %2434 = vmatprep.mubr.bf16.mxu0 %v2528_v41  ;;  %v1886_v41 = vld [vmem:[%s2988_s30 + $0x20] sm:$0xff] }
  0x3c   : > { %1091 = vperm.xlu0 %2512, %v977_v42   ;;  %1096 = vperm.xlu1 %2513, %v978_v43   ;;  %v2549_v42 = vld [vmem:[%s3404_s1 + $0xd8] sm:$0xff]   ;;  %v2550_v43 = vld [vmem:[%s3404_s1 + $0xe0] sm:$0xff]  }
  0x40   : > { %1181 = vperm.xlu0 %2512, %v995_v44   ;;  %1186 = vperm.xlu1 %2513, %v996_v45   ;;  %v1889_v44 = vld [vmem:[%s2988_s30 + $0x38] sm:$0xff]  ;;  %v1888_v45 = vld [vmem:[%s2988_s30 + $0x30] sm:$0xff] }
  0x41   : > { %2435 = vmatmul.mubr.bf16.gmra.mrb[12].mxu0 %v2529_v46  ;;  %v1891_v46 = vld [vmem:[%s2988_s30 + $0x48] sm:$0xff] }
  0x42   : > { %2438 = vmatprep.mubr.bf16.mxu0 %v2530_v47  ;;  %v1890_v47 = vld [vmem:[%s2988_s30 + $0x40] sm:$0xff] }
  0x44   : > { %1101 = vperm.xlu0 %2512, %v979_v48   ;;  %1106 = vperm.xlu1 %2513, %v980_v49   ;;  %v2551_v48 = vld [vmem:[%s3404_s1 + $0xe8] sm:$0xff]   ;;  %v2552_v49 = vld [vmem:[%s3404_s1 + $0xf0] sm:$0xff]  }
  0x48   : > { %1271 = vperm.xlu0 %2512, %v1013_v50   ;;  %1276 = vperm.xlu1 %2513, %v1014_v51   ;;  %v1893_v50 = vld [vmem:[%s2988_s30 + $0x58] sm:$0xff]  ;;  %v1892_v51 = vld [vmem:[%s2988_s30 + $0x50] sm:$0xff] }
  0x49   : > { %2439 = vmatmul.mubr.bf16.gmra.mrb[16].mxu0 %v2531_v52 }
  0x4a   : > { %2442 = vmatprep.mubr.bf16.mxu0 %v2532_v53 }
  0x4c   : > { %1191 = vperm.xlu0 %2512, %v997_v54   ;;  %1196 = vperm.xlu1 %2513, %v998_v55   ;;  %v1895_v54 = vld [vmem:[%s2988_s30 + $0x68] sm:$0xff]  ;;  %v1894_v55 = vld [vmem:[%s2988_s30 + $0x60] sm:$0xff] }
  0x50   : > { %1281 = vperm.xlu0 %2512, %v1015_v56   ;;  %1286 = vperm.xlu1 %2513, %v1016_v57   ;;  %v2553_v56 = vld [vmem:[%s3404_s1 + $0xf8] sm:$0xff]  }
  0x51   : > { %2443 = vmatmul.mubr.bf16.gmra.mrb[20].mxu0 %v2533_v58  ;;  %v1897_v58 = vld [vmem:[%s2988_s30 + $0x78] sm:$0xff] }
  0x52   : > { %2446 = vmatprep.mubr.bf16.mxu0 %v2534_v59  ;;  %v1896_v59 = vld [vmem:[%s2988_s30 + $0x70] sm:$0xff]  ;;  %s3348_s30 = scalar_lea.vmem %s3409_s6, %s2159_s19 }
  0x54   : > { %1201 = vperm.xlu0 %2512, %v999_v60   ;;  %1206 = vperm.xlu1 %2513, %v1000_v61  }
  0x58   : > { %1291 = vperm.xlu0 %2512, %v1017_v62   ;;  %1296 = vperm.xlu1 %2513, %v1018_v63  }
  0x59   : > { %2447 = vmatmul.mubr.bf16.gmra.mrb[24].mxu0 %v2535_v0 }
  0x5a   : > { %2450 = vmatprep.mubr.bf16.mxu0 %v2536_v1 }
  0x5c   : > { %1211 = vperm.xlu0 %2512, %v1001_v2   ;;  %1216 = vperm.xlu1 %2513, %v1002_v3  }
  0x60   : > { %1301 = vperm.xlu0 %2512, %v1019_v4   ;;  %1306 = vperm.xlu1 %2513, %v1020_v5  }
  0x61   : > { %2451 = vmatmul.mubr.bf16.gmra.mrb[28].mxu0 %v2537_v6 }
  0x62   : > { %2454 = vmatprep.mubr.bf16.mxu0 %v2538_v7  ;;  %v2556_v7 = vld [vmem:[%s2848_s11 + $0x4] ss:$16 sps:$4 sm:$0xff]  }
  0x63   : > { %1685 = vmatprep.mubr.bf16.mxu1 %v2556_v7 }
  0x64   : > { %1221 = vperm.xlu0 %2512, %v1003_v8   ;;  %1226 = vperm.xlu1 %2513, %v1004_v9  }
  0x68   : > { %1311 = vperm.xlu0 %2512, %v1021_v10   ;;  %1316 = vperm.xlu1 %2513, %v1022_v11  }
  0x69   : > { %2455 = vmatmul.mubr.bf16.gmra.mrb[32].mxu0 %v2539_v12 }
  0x6a   : > { %2458 = vmatprep.mubr.bf16.mxu0 %v2540_v13 }
  0x6c   : > { %1231 = vperm.xlu0 %2512, %v1005_v14   ;;  %1236 = vperm.xlu1 %2513, %v1006_v15  }
  0x70   : > { %1321 = vperm.xlu0 %2512, %v1023_v16   ;;  %1326 = vperm.xlu1 %2513, %v1024_v17  }
  0x71   : > { %2459 = vmatmul.mubr.bf16.gmra.mrb[36].mxu0 %v2541_v18 }
  0x72   : > { %2462 = vmatprep.mubr.bf16.mxu0 %v2542_v19 }
  0x74   : > { %1241 = vperm.xlu0 %2512, %v1007_v20   ;;  %1246 = vperm.xlu1 %2513, %v1008_v21  }
  0x78   : > { %1331 = vperm.xlu0 %2512, %v1025_v22   ;;  %1336 = vperm.xlu1 %2513, %v1026_v23  }
  0x79   : > { %2463 = vmatmul.mubr.bf16.gmra.mrb[40].mxu0 %v2543_v24 }
  0x7a   : > { %2466 = vmatprep.mubr.bf16.mxu0 %v2544_v25 }
  0x7c   : > { %1251 = vperm.xlu0 %2512, %v1009_v26   ;;  %1256 = vperm.xlu1 %2513, %v1010_v27  }
  0x80   : > { %1341 = vperm.xlu0 %2512, %v1027_v28   ;;  %1346 = vperm.xlu1 %2513, %v1028_v29  }
  0x81   : > { %2467 = vmatmul.mubr.bf16.gmra.mrb[44].mxu0 %v2545_v30 }
  0x82   : > { %2470 = vmatprep.mubr.bf16.mxu0 %v2546_v31 }
  0x84   : > { %1261 = vperm.xlu0 %2512, %v1011_v32   ;;  %1266 = vperm.xlu1 %2513, %v1012_v33  }
  0x87   : > { %v3020_v52 = vpop.permute.xlu0 %1111  ;;  %v1032_v53 = vpop.permute.xlu1 %1031 }
  0x88   : > { %1921 = vperm.xlu1 %2513, %v1883_v34   ;;  %1916 = vperm.xlu0 %2512, %v1882_v35  }
  0x89   : > { %2471 = vmatmul.mubr.bf16.gmra.mrb[48].mxu0 %v2547_v36 }
  0x8a   : > { %2474 = vmatprep.mubr.bf16.mxu0 %v2548_v37 }
  0x8b   : > { %v3027_v57 = vpop.permute.xlu0 %1116  ;;  %v1037_v60 = vpop.permute.xlu1 %1036 }
  0x8c   : > { %1931 = vperm.xlu1 %2513, %v1885_v38   ;;  %1926 = vperm.xlu0 %2512, %v1884_v39  }
  0x8f   : > { %v3031_v61 = vpop.permute.xlu0 %1121  ;;  %v3033_v62 = vpop.permute.xlu1 %1126 }
  0x90   : > { %1941 = vperm.xlu1 %2513, %v1887_v40   ;;  %1936 = vperm.xlu0 %2512, %v1886_v41  }
  0x91   : > { %2475 = vmatmul.mubr.bf16.gmra.mrb[52].mxu0 %v2549_v42 }
  0x92   : > { %2478 = vmatprep.mubr.bf16.mxu0 %v2550_v43 }
  0x93   : > { %v1042_v63 = vpop.permute.xlu0 %1041  ;;  %v1047_v0 = vpop.permute.xlu1 %1046 }
  0x94   : > { %1951 = vperm.xlu1 %2513, %v1889_v44   ;;  %1946 = vperm.xlu0 %2512, %v1888_v45  }
  0x97   : > { %v3035_v1 = vpop.permute.xlu0 %1131  ;;  %v3037_v2 = vpop.permute.xlu1 %1136 }
  0x98   : > { %1961 = vperm.xlu1 %2513, %v1891_v46   ;;  %1956 = vperm.xlu0 %2512, %v1890_v47  }
  0x99   : > { %2479 = vmatmul.mubr.bf16.gmra.mrb[56].mxu0 %v2551_v48 }
  0x9a   : > { %2482 = vmatprep.mubr.bf16.mxu0 %v2552_v49 }
  0x9b   : > { %v1052_v3 = vpop.permute.xlu0 %1051  ;;  %v1057_v4 = vpop.permute.xlu1 %1056 }
  0x9c   : > { %1971 = vperm.xlu1 %2513, %v1893_v50   ;;  %1966 = vperm.xlu0 %2512, %v1892_v51  }
  0x9f   : > { %v3039_v5 = vpop.permute.xlu0 %1141  ;;  %v3041_v6 = vpop.permute.xlu1 %1146 }
  0xa0   : > { %1981 = vperm.xlu1 %2513, %v1895_v54   ;;  %1976 = vperm.xlu0 %2512, %v1894_v55  }
  0xa1   : > { %2483 = vmatmul.mubr.bf16.gmra.mrb[60].mxu0 %v2553_v56 }
  0xa3   : > { %v1062_v8 = vpop.permute.xlu0 %1061  ;;  %v1067_v9 = vpop.permute.xlu1 %1066 }
  0xa4   : > { %1991 = vperm.xlu1 %2513, %v1897_v58   ;;  %1986 = vperm.xlu0 %2512, %v1896_v59  }
  0xa7   : > { %v3044_v10 = vpop.permute.xlu0 %1151  ;;  %v3046_v11 = vpop.permute.xlu1 %1156 }
  0xab   : > { %v1072_v12 = vpop.permute.xlu0 %1071  ;;  %v1077_v13 = vpop.permute.xlu1 %1076 }
  0xaf   : > { %v3048_v14 = vpop.permute.xlu0 %1161  ;;  %v3050_v15 = vpop.permute.xlu1 %1166 }
  0xb3   : > { %v1082_v16 = vpop.permute.xlu0 %1081  ;;  %v1087_v17 = vpop.permute.xlu1 %1086 }
  0xb7   : > { %v3052_v18 = vpop.permute.xlu0 %1171  ;;  %v3054_v19 = vpop.permute.xlu1 %1176 }
  0xbb   : > { %v1092_v20 = vpop.permute.xlu0 %1091  ;;  %v1097_v21 = vpop.permute.xlu1 %1096 }
  0xbf   : > { %v3056_v22 = vpop.permute.xlu0 %1181  ;;  %v3058_v23 = vpop.permute.xlu1 %1186 }
  0xc3   : > { %v1102_v24 = vpop.permute.xlu0 %1101  ;;  %v1107_v25 = vpop.permute.xlu1 %1106 }
  0xc7   : > { %v3060_v26 = vpop.permute.xlu0 %1271  ;;  %v3062_v27 = vpop.permute.xlu1 %1276 }
  0xcb   : > { %v3068_v34 = vpop.permute.xlu0 %1191  ;;  %v3072_v38 = vpop.permute.xlu1 %1196 }
  0xcf   : > { %v3074_v43 = vpop.permute.xlu0 %1281  ;;  %v3080_v47 = vpop.permute.xlu1 %1286 }
  0xd3   : > { %v3087_v54 = vpop.permute.xlu0 %1201  ;;  %v3089_v56 = vpop.permute.xlu1 %1206 }
  0xfc   : > { %v2424_v28 = vpop.f32.mrb[0].mxu0 }
  0xfd   : > { %v710_v29 = vpop.f32.mrb[1].mxu0  ;;  %v3064_v31 = vmul.f32 %v2424_v28, %v1042_v63 }
  0xfe   : > { %v2425_v30 = vpop.f32.mrb[2].mxu0  ;;  %v1349_v35 = vmul.f32 %v1032_v53, %v710_v29 }
  0xff   : > { %v3066_v32 = vmul.f32 %v2425_v30, %v1047_v0  ;;  %v713_v33 = vpop.f32.mrb[3].mxu0 }
 0x100   : > { %v1350_v37 = vmul.f32 %v1037_v60, %v713_v33 }
 0x101   : > { %v1414_v36 = vpack.c.bf16 %v3066_v32, %v3064_v31 }
 0x102   : > { %v1413_v39 = vpack.c.bf16 %v1350_v37, %v1349_v35 }
 0x104   : > { %v2428_v40 = vpop.f32.mrb[4].mxu0 }
 0x105   : > { %v726_v41 = vpop.f32.mrb[5].mxu0  ;;  %v3076_v44 = vmul.f32 %v2428_v40, %v1062_v8  ;;  %v3103_v8 = vpop.permute.xlu0 %1291 }
 0x106   : > { %v2429_v42 = vpop.f32.mrb[6].mxu0  ;;  %v3082_v48 = vmul.f32 %v1052_v3, %v726_v41 }
 0x107   : > { %v3078_v45 = vmul.f32 %v2429_v42, %v1067_v9  ;;  %v729_v46 = vpop.f32.mrb[7].mxu0  ;;  %v3105_v9 = vpop.permute.xlu1 %1296 }
 0x108   : > { %v1354_v49 = vmul.f32 %v1057_v4, %v729_v46 }
 0x109   : > { %v1416_v50 = vpack.c.bf16 %v3078_v45, %v3076_v44  ;;  %v3115_v35 = vpop.permute.xlu0 %1211 }
 0x10a   : > { %v1415_v51 = vpack.c.bf16 %v1354_v49, %v3082_v48 }
 0x10b   : > { %v3119_v40 = vpop.permute.xlu1 %1216 }
 0x10c   : > { %v2432_v53 = vpop.f32.mrb[8].mxu0 }
 0x10d   : > { %v742_v55 = vpop.f32.mrb[9].mxu0  ;;  %v3091_v59 = vmul.f32 %v2432_v53, %v1082_v16 }
 0x10e   : > { %v2433_v58 = vpop.f32.mrb[10].mxu0  ;;  %v3095_v0 = vmul.f32 %v1072_v12, %v742_v55 }
 0x10f   : > { %v3093_v60 = vmul.f32 %v2433_v58, %v1087_v17  ;;  %v745_v63 = vpop.f32.mrb[11].mxu0  ;;  %v3127_v49 = vpop.permute.xlu1 %1306 }
 0x110   : > { %v3097_v3 = vmul.f32 %v1077_v13, %v745_v63 }
 0x111   : > { %v1418_v4 = vpack.c.bf16 %v3093_v60, %v3091_v59 }
 0x112   : > { %v1417_v7 = vpack.c.bf16 %v3097_v3, %v3095_v0 }
 0x114   : > { %v2436_v28 = vpop.f32.mrb[12].mxu0 }
 0x115   : > { %v758_v16 = vpop.f32.mrb[13].mxu0  ;;  %v3107_v17 = vmul.f32 %v2436_v28, %v1102_v24 }
 0x116   : > { %v2437_v29 = vpop.f32.mrb[14].mxu0  ;;  %v3111_v13 = vmul.f32 %v1092_v20, %v758_v16 }
 0x117   : > { %v3109_v30 = vmul.f32 %v2437_v29, %v1107_v25  ;;  %v761_v12 = vpop.f32.mrb[15].mxu0  ;;  %v3123_v25 = vpop.permute.xlu0 %1301 }
 0x118   : > { %v3113_v33 = vmul.f32 %v1097_v21, %v761_v12  ;;  %v3133_v12 = vpop.permute.xlu1 %1226 }
 0x119   : > { %v1420_v37 = vpack.c.bf16 %v3109_v30, %v3107_v17 }
 0x11a   : > { %v1419_v41 = vpack.c.bf16 %v3113_v33, %v3111_v13 }
 0x11b   : > { %v3131_v16 = vpop.permute.xlu0 %1221 }
 0x11c   : > { %v2440_v42 = vpop.f32.mrb[16].mxu0 }
 0x11d   : > { %v774_v24 = vpop.f32.mrb[17].mxu0  ;;  %v1367_v20 = vmul.f32 %v2440_v42, %v3031_v61 }
 0x11e   : > { %v2441_v46 = vpop.f32.mrb[18].mxu0  ;;  %v1365_v53 = vmul.f32 %v3020_v52, %v774_v24 }
 0x11f   : > { %v1368_v21 = vmul.f32 %v2441_v46, %v3033_v62  ;;  %v777_v48 = vpop.f32.mrb[19].mxu0 }
 0x120   : > { %v1366_v55 = vmul.f32 %v3027_v57, %v777_v48 }
 0x121   : > { %v1422_v58 = vpack.c.bf16 %v1368_v21, %v1367_v20  ;;  %v3144_v21 = vpop.permute.xlu1 %1316 }
 0x122   : > { %v1421_v63 = vpack.c.bf16 %v1366_v55, %v1365_v53 }
 0x124   : > { %v2444_v28 = vpop.f32.mrb[20].mxu0  ;;  %2278 = vmatprep.subr.bf16.mxu1 %v1421_v63 }
 0x125   : > { %v790_v29 = vpop.f32.mrb[21].mxu0  ;;  %2279 = vmatpush3.bf16.msra.mxu1 %v1413_v39  ;;  %v1371_v62 = vmul.f32 %v2444_v28, %v3039_v5  ;;  %v3142_v39 = vpop.permute.xlu0 %1311 }
 0x126   : > { %v2445_v61 = vpop.f32.mrb[22].mxu0  ;;  %2280 = vmatprep.subr.bf16.mxu1 %v1422_v58  ;;  %v1369_v52 = vmul.f32 %v3035_v1, %v790_v29  ;;  %v3155_v58 = vpop.permute.xlu1 %1236 }
 0x127   : > { %v1372_v42 = vmul.f32 %v2445_v61, %v3041_v6  ;;  %v793_v46 = vpop.f32.mrb[23].mxu0 }
 0x128   : > { %v1370_v57 = vmul.f32 %v3037_v2, %v793_v46 }
 0x129   : > { %v1424_v24 = vpack.c.bf16 %v1372_v42, %v1371_v62  ;;  %2281 = vmatpush3.bf16.msra.mxu1 %v1414_v36  ;;  %v3150_v32 = vpop.permute.xlu0 %1231  ;;  %v2554_v42 = vld [vmem:[%s2848_s11] ss:$16 sps:$4 sm:$0xff]  }
 0x12a   : > { %v1423_v20 = vpack.c.bf16 %v1370_v57, %v1369_v52  ;;  %v3164_v45 = vpop.permute.xlu1 %1326 }
 0x12c   : > { %v2448_v48 = vpop.f32.mrb[24].mxu0  ;;  %2282 = vmatprep.subr.bf16.mxu1 %v1423_v20 }
 0x12d   : > { %v806_v5 = vpop.f32.mrb[25].mxu0  ;;  %2283 = vmatpush3.bf16.msra.mxu1 %v1415_v51  ;;  %v1375_v1 = vmul.f32 %v2448_v48, %v3048_v14 }
 0x12e   : > { %v2449_v6 = vpop.f32.mrb[26].mxu0  ;;  %2284 = vmatprep.subr.bf16.mxu1 %v1424_v24  ;;  %v1373_v55 = vmul.f32 %v3044_v10, %v806_v5  ;;  %v2559_v24 = vld [vmem:[%s2848_s11 + $0x20] ss:$16 sps:$4 sm:$0xff]   ;;  %v2560_v5 = vld [vmem:[%s2848_s11 + $0x44] ss:$16 sps:$4 sm:$0xff]  }
 0x12f   : > { %v1376_v2 = vmul.f32 %v2449_v6, %v3050_v15  ;;  %v809_v53 = vpop.f32.mrb[27].mxu0 }
 0x130   : > { %v1374_v31 = vmul.f32 %v3046_v11, %v809_v53  ;;  %v3160_v11 = vpop.permute.xlu0 %1321 }
 0x131   : > { %v1426_v36 = vpack.c.bf16 %v1376_v2, %v1375_v1  ;;  %2285 = vmatpush3.bf16.msra.mxu1 %v1416_v50 }
 0x132   : > { %v1425_v51 = vpack.c.bf16 %v1374_v31, %v1373_v55 }
 0x134   : > { %v2452_v63 = vpop.f32.mrb[28].mxu0  ;;  %2286 = vmatprep.subr.bf16.mxu1 %v1425_v51 }
 0x135   : > { %v822_v14 = vpop.f32.mrb[29].mxu0  ;;  %2287 = vmatpush3.bf16.msra.mxu1 %v1417_v7  ;;  %v1379_v15 = vmul.f32 %v2452_v63, %v3056_v22  ;;  %v1242_v22 = vpop.permute.xlu0 %1241  ;;  %v2562_v63 = vld [vmem:[%s2848_s11 + $0x40] ss:$16 sps:$4 sm:$0xff]  }
 0x136   : > { %v2453_v10 = vpop.f32.mrb[30].mxu0  ;;  %2288 = vmatprep.subr.bf16.mxu1 %v1426_v36  ;;  %v1377_v50 = vmul.f32 %v3052_v18, %v822_v14 }
 0x137   : > { %v1380_v28 = vmul.f32 %v2453_v10, %v3058_v23  ;;  %v825_v44 = vpop.f32.mrb[31].mxu0  ;;  %v1247_v23 = vpop.permute.xlu1 %1246  ;;  %v2563_v10 = vld [vmem:[%s2848_s11 + $0x64] ss:$16 sps:$4 sm:$0xff]  }
 0x138   : > { %v1378_v29 = vmul.f32 %v3054_v19, %v825_v44 }
 0x139   : > { %v1428_v61 = vpack.c.bf16 %v1380_v28, %v1379_v15  ;;  %2289 = vmatpush3.bf16.msra.mxu1 %v1418_v4  ;;  %v3195_v33 = vpop.permute.xlu0 %1331 }
 0x13a   : > { %v1427_v0 = vpack.c.bf16 %v1378_v29, %v1377_v50 }
 0x13c   : > { %v2456_v3 = vpop.f32.mrb[32].mxu0  ;;  %2290 = vmatprep.subr.bf16.mxu1 %v1427_v0 }
 0x13d   : > { %v838_v7 = vpop.f32.mrb[33].mxu0  ;;  %2291 = vmatpush3.bf16.msra.mxu1 %v1419_v41  ;;  %v3175_v19 = vmul.f32 %v2456_v3, %v3087_v54  ;;  %v2557_v54 = vld [vmem:[%s2848_s11 + $0x24] ss:$16 sps:$4 sm:$0xff]   ;;  %v1252_v20 = vpop.permute.xlu0 %1251 }
 0x13e   : > { %v2457_v18 = vpop.f32.mrb[34].mxu0  ;;  %2292 = vmatprep.subr.bf16.mxu1 %v1428_v61  ;;  %v3181_v4 = vmul.f32 %v3068_v34, %v838_v7  ;;  %v3197_v34 = vpop.permute.xlu1 %1336  ;;  %v2565_v7 = vld [vmem:[%s2848_s11 + $0x60] ss:$16 sps:$4 sm:$0xff]  }
 0x13f   : > { %v3178_v59 = vmul.f32 %v2457_v18, %v3089_v56  ;;  %v841_v60 = vpop.f32.mrb[35].mxu0  ;;  %v2566_v18 = vld [vmem:[%s2848_s11 + $0x84] ss:$16 sps:$4 sm:$0xff]  }
 0x140   : > { %v3184_v62 = vmul.f32 %v3072_v38, %v841_v60 }
 0x141   : > { %v1430_v13 = vpack.c.bf16 %v3178_v59, %v3175_v19  ;;  %2293 = vmatpush3.bf16.msra.mxu1 %v1420_v37  ;;  %v3217_v2 = vpop.permute.xlu0 %1341 }
 0x142   : > { %v1429_v56 = vpack.c.bf16 %v3184_v62, %v3181_v4  ;;  %v1257_v6 = vpop.permute.xlu1 %1256  ;;  %v2572_v4 = vld [vmem:[%s2848_s11 + $0xc4] ss:$16 sps:$4 sm:$0xff]  }
 0x144   : > { %v2460_v38 = vpop.f32.mrb[36].mxu0  ;;  %1686 = vmatmul.mubr.bf16.vlgmr.msra.gmra.mrb[0].mxu1 %v2554_v42 }
 0x145   : > { %v854_v41 = vpop.f32.mrb[37].mxu0  ;;  %1693 = vmatprep.mubr.bf16.mxu1 %v2557_v54  ;;  %v3200_v52 = vmul.f32 %v2460_v38, %v3131_v16  ;;  %v1262_v44 = vpop.permute.xlu0 %1261 }
 0x146   : > { %v2461_v46 = vpop.f32.mrb[38].mxu0  ;;  %v3206_v37 = vmul.f32 %v3115_v35, %v854_v41  ;;  %v3223_v31 = vpop.permute.xlu1 %1346 }
 0x147   : > { %v3203_v17 = vmul.f32 %v2461_v46, %v3133_v12  ;;  %v857_v30 = vpop.f32.mrb[39].mxu0 }
 0x148   : > { %v3209_v57 = vmul.f32 %v3119_v40, %v857_v30 }
 0x149   : > { %v1432_v48 = vpack.c.bf16 %v3203_v17, %v3200_v52 }
 0x14a   : > { %v1431_v16 = vpack.c.bf16 %v3209_v57, %v3206_v37  ;;  %v2575_v37 = vld [vmem:[%s2848_s11 + $0xe4] ss:$16 sps:$4 sm:$0xff]  }
 0x14c   : > { %v2464_v12 = vpop.f32.mrb[40].mxu0  ;;  %1694 = vmatmul.mubr.bf16.gmra.mrb[4].mxu1 %v2559_v24 }
 0x14d   : > { %v870_v1 = vpop.f32.mrb[41].mxu0  ;;  %1701 = vmatprep.mubr.bf16.mxu1 %v2560_v5  ;;  %v3219_v40 = vmul.f32 %v2464_v12, %v1242_v22  ;;  %v2568_v5 = vld [vmem:[%s2848_s11 + $0x80] ss:$16 sps:$4 sm:$0xff]   ;;  %v2569_v12 = vld [vmem:[%s2848_s11 + $0xa4] ss:$16 sps:$4 sm:$0xff]  }
 0x14e   : > { %v2465_v35 = vpop.f32.mrb[42].mxu0  ;;  %v3226_v36 = vmul.f32 %v3150_v32, %v870_v1  ;;  %v1267_v32 = vpop.permute.xlu1 %1266 }
 0x14f   : > { %v3221_v53 = vmul.f32 %v2465_v35, %v1247_v23  ;;  %v873_v55 = vpop.f32.mrb[43].mxu0 }
 0x150   : > { %v3229_v51 = vmul.f32 %v3155_v58, %v873_v55 }
 0x151   : > { %v1434_v14 = vpack.c.bf16 %v3221_v53, %v3219_v40  ;;  %v2584_v40 = vld [vmem:[%s2848_s11 + $0x4c] ss:$16 sps:$4 sm:$0xff]   ;;  %v2586_v53 = vld [vmem:[%s2848_s11 + $0x48] ss:$16 sps:$4 sm:$0xff]  }
 0x152   : > { %v1433_v15 = vpack.c.bf16 %v3229_v51, %v3226_v36  ;;  %v2580_v36 = vld [vmem:[%s2848_s11 + $0xc] ss:$16 sps:$4 sm:$0xff]  }
 0x154   : > { %v2468_v28 = vpop.f32.mrb[44].mxu0  ;;  %1702 = vmatmul.mubr.bf16.gmra.mrb[8].mxu1 %v2562_v63 }
 0x155   : > { %v886_v50 = vpop.f32.mrb[45].mxu0  ;;  %1709 = vmatprep.mubr.bf16.mxu1 %v2563_v10  ;;  %v3237_v61 = vmul.f32 %v2468_v28, %v1262_v44  ;;  %v2571_v28 = vld [vmem:[%s2848_s11 + $0xa0] ss:$16 sps:$4 sm:$0xff]  }
 0x156   : > { %v2469_v29 = vpop.f32.mrb[46].mxu0  ;;  %v3241_v3 = vmul.f32 %v1252_v20, %v886_v50  ;;  %v2574_v50 = vld [vmem:[%s2848_s11 + $0xc0] ss:$16 sps:$4 sm:$0xff]  }
 0x157   : > { %v3239_v58 = vmul.f32 %v2469_v29, %v1267_v32  ;;  %v889_v0 = vpop.f32.mrb[47].mxu0  ;;  %v2577_v29 = vld [vmem:[%s2848_s11 + $0xe0] ss:$16 sps:$4 sm:$0xff]  }
 0x158   : > { %v3243_v22 = vmul.f32 %v1257_v6, %v889_v0 }
 0x159   : > { %v1436_v23 = vpack.c.bf16 %v3239_v58, %v3237_v61  ;;  %v2592_v61 = vld [vmem:[%s2848_s11 + $0x88] ss:$16 sps:$4 sm:$0xff]   ;;  %v2593_v58 = vld [vmem:[%s2848_s11 + $0xac] ss:$16 sps:$4 sm:$0xff]  }
 0x15a   : > { %v1435_v60 = vpack.c.bf16 %v3243_v22, %v3241_v3  ;;  %v2595_v3 = vld [vmem:[%s2848_s11 + $0xa8] ss:$16 sps:$4 sm:$0xff]   ;;  %v2596_v22 = vld [vmem:[%s2848_s11 + $0xcc] ss:$16 sps:$4 sm:$0xff]  }
 0x15c   : > { %v2472_v42 = vpop.f32.mrb[48].mxu0  ;;  %1710 = vmatmul.mubr.bf16.gmra.mrb[12].mxu1 %v2565_v7  ;;  %v2598_v7 = vld [vmem:[%s2848_s11 + $0xc8] ss:$16 sps:$4 sm:$0xff]  }
 0x15d   : > { %v902_v54 = vpop.f32.mrb[49].mxu0  ;;  %1717 = vmatprep.mubr.bf16.mxu1 %v2566_v18  ;;  %v1399_v41 = vmul.f32 %v2472_v42, %v3074_v43  ;;  %v2601_v18 = vld [vmem:[%s2848_s11 + $0xe8] ss:$16 sps:$4 sm:$0xff]  }
 0x15e   : > { %v2473_v38 = vpop.f32.mrb[50].mxu0  ;;  %v1397_v24 = vmul.f32 %v3060_v26, %v902_v54 }
 0x15f   : > { %v1400_v46 = vmul.f32 %v2473_v38, %v3080_v47  ;;  %v905_v30 = vpop.f32.mrb[51].mxu0 }
 0x160   : > { %v1398_v20 = vmul.f32 %v3062_v27, %v905_v30 }
 0x161   : > { %v1438_v6 = vpack.c.bf16 %v1400_v46, %v1399_v41 }
 0x162   : > { %v1437_v1 = vpack.c.bf16 %v1398_v20, %v1397_v24 }
 0x164   : > { %v2476_v35 = vpop.f32.mrb[52].mxu0  ;;  %1718 = vmatmul.mubr.bf16.gmra.mrb[16].mxu1 %v2568_v5  ;;  %2342 = vmatprep.subr.bf16.mxu1 %v1437_v1 }
 0x165   : > { %v918_v55 = vpop.f32.mrb[53].mxu0  ;;  %2343 = vmatpush3.bf16.msra.mxu1 %v1429_v56  ;;  %1725 = vmatprep.mubr.bf16.mxu1 %v2569_v12  ;;  %v1403_v26 = vmul.f32 %v2476_v35, %v3123_v25 }
 0x166   : > { %v2477_v43 = vpop.f32.mrb[54].mxu0  ;;  %2344 = vmatprep.subr.bf16.mxu1 %v1438_v6  ;;  %v1401_v63 = vmul.f32 %v3103_v8, %v918_v55 }
 0x167   : > { %v1404_v27 = vmul.f32 %v2477_v43, %v3127_v49  ;;  %v921_v47 = vpop.f32.mrb[55].mxu0 }
 0x168   : > { %v1402_v10 = vmul.f32 %v3105_v9, %v921_v47 }
 0x169   : > { %v1440_v44 = vpack.c.bf16 %v1404_v27, %v1403_v26  ;;  %2345 = vmatpush3.bf16.msra.mxu1 %v1430_v13 }
 0x16a   : > { %v1439_v62 = vpack.c.bf16 %v1402_v10, %v1401_v63 }
 0x16c   : > { %v2480_v56 = vpop.f32.mrb[56].mxu0  ;;  %1726 = vmatmul.mubr.bf16.gmra.mrb[20].mxu1 %v2571_v28  ;;  %2346 = vmatprep.subr.bf16.mxu1 %v1439_v62 }
 0x16d   : > { %v934_v25 = vpop.f32.mrb[57].mxu0  ;;  %2347 = vmatpush3.bf16.msra.mxu1 %v1431_v16  ;;  %1733 = vmatprep.mubr.bf16.mxu1 %v2572_v4  ;;  %v1407_v9 = vmul.f32 %v2480_v56, %v3160_v11 }
 0x16e   : > { %v2481_v8 = vpop.f32.mrb[58].mxu0  ;;  %2348 = vmatprep.subr.bf16.mxu1 %v1440_v44  ;;  %v1405_v59 = vmul.f32 %v3142_v39, %v934_v25 }
 0x16f   : > { %v1408_v49 = vmul.f32 %v2481_v8, %v3164_v45  ;;  %v937_v19 = vpop.f32.mrb[59].mxu0 }
 0x170   : > { %v1406_v13 = vmul.f32 %v3144_v21, %v937_v19 }
 0x171   : > { %v1442_v32 = vpack.c.bf16 %v1408_v49, %v1407_v9  ;;  %2349 = vmatpush3.bf16.msra.mxu1 %v1432_v48 }
 0x172   : > { %v1441_v57 = vpack.c.bf16 %v1406_v13, %v1405_v59 }
 0x174   : > { %v2484_v16 = vpop.f32.mrb[60].mxu0  ;;  %1734 = vmatmul.mubr.bf16.gmra.mrb[24].mxu1 %v2574_v50  ;;  %2350 = vmatprep.subr.bf16.mxu1 %v1441_v57 }
 0x175   : > { %v950_v11 = vpop.f32.mrb[61].mxu0  ;;  %2351 = vmatpush3.bf16.msra.mxu1 %v1433_v15  ;;  %1741 = vmatprep.mubr.bf16.mxu1 %v2575_v37  ;;  %v1411_v21 = vmul.f32 %v2484_v16, %v3217_v2  ;;  %v2583_v2 = vld [vmem:[%s2848_s11 + $0x28] ss:$16 sps:$4 sm:$0xff]   ;;  %v2590_v15 = vld [vmem:[%s2848_s11 + $0x8c] ss:$16 sps:$4 sm:$0xff]  }
 0x176   : > { %v2485_v39 = vpop.f32.mrb[62].mxu0  ;;  %2352 = vmatprep.subr.bf16.mxu1 %v1442_v32  ;;  %v1409_v17 = vmul.f32 %v3195_v33, %v950_v11  ;;  %v2578_v33 = vld [vmem:[%s2848_s11 + $0x8] ss:$16 sps:$4 sm:$0xff]  }
 0x177   : > { %v1412_v45 = vmul.f32 %v2485_v39, %v3223_v31  ;;  %v953_v52 = vpop.f32.mrb[63].mxu0  ;;  %v2587_v31 = vld [vmem:[%s2848_s11 + $0x6c] ss:$16 sps:$4 sm:$0xff]  }
 0x178   : > { %v1410_v48 = vmul.f32 %v3197_v34, %v953_v52  ;;  %v2581_v34 = vld [vmem:[%s2848_s11 + $0x2c] ss:$16 sps:$4 sm:$0xff]  }
 0x179   : > { %v1444_v0 = vpack.c.bf16 %v1412_v45, %v1411_v21  ;;  %2353 = vmatpush3.bf16.msra.mxu1 %v1434_v14  ;;  %v2589_v14 = vld [vmem:[%s2848_s11 + $0x68] ss:$16 sps:$4 sm:$0xff]  }
 0x17a   : > { %v1443_v51 = vpack.c.bf16 %v1410_v48, %v1409_v17 }
 0x17c   : > { %1742 = vmatmul.mubr.bf16.gmra.mrb[28].mxu1 %v2577_v29  ;;  %2354 = vmatprep.subr.bf16.mxu1 %v1443_v51 }
 0x17d   : > { %2355 = vmatpush3.bf16.msra.mxu1 %v1435_v60  ;;  %1782 = vmatprep.mubr.bf16.mxu1 %v2580_v36 }
 0x17e   : > { %2356 = vmatprep.subr.bf16.mxu1 %v1444_v0 }
 0x181   : > { %2357 = vmatpush3.bf16.msra.mxu1 %v1436_v23  ;;  %v2599_v23 = vld [vmem:[%s2848_s11 + $0xec] ss:$16 sps:$4 sm:$0xff]  }
 0x184   : > { %1783 = vmatmul.mubr.bf16.vlgmr.msra.gmra.mrb[32].mxu1 %v2578_v33 }
 0x185   : > { %1790 = vmatprep.mubr.bf16.mxu1 %v2581_v34 }
 0x18c   : > { %1791 = vmatmul.mubr.bf16.gmra.mrb[36].mxu1 %v2583_v2 }
 0x18d   : > { %1798 = vmatprep.mubr.bf16.mxu1 %v2584_v40 }
 0x194   : > { %1799 = vmatmul.mubr.bf16.gmra.mrb[40].mxu1 %v2586_v53 }
 0x195   : > { %1806 = vmatprep.mubr.bf16.mxu1 %v2587_v31 }
 0x19c   : > { %1807 = vmatmul.mubr.bf16.gmra.mrb[44].mxu1 %v2589_v14 }
 0x19d   : > { %1814 = vmatprep.mubr.bf16.mxu1 %v2590_v15  ;;  %v1917_v15 = vpop.permute.xlu0 %1916 }
 0x1a4   : > { %1815 = vmatmul.mubr.bf16.gmra.mrb[48].mxu1 %v2592_v61  ;;  %v3341_v61 = vld [vmem:[%s3408_s5] ss:$0 sm:$0xff] }
 0x1a5   : > { %1822 = vmatprep.mubr.bf16.mxu1 %v2593_v58 }
 0x1ac   : > { %1823 = vmatmul.mubr.bf16.gmra.mrb[52].mxu1 %v2595_v3 }
 0x1ad   : > { %1830 = vmatprep.mubr.bf16.mxu1 %v2596_v22  ;;  %v1922_v22 = vpop.permute.xlu1 %1921 }
 0x1b4   : > { %1831 = vmatmul.mubr.bf16.gmra.mrb[56].mxu1 %v2598_v7 }
 0x1b5   : > { %1838 = vmatprep.mubr.bf16.mxu1 %v2599_v23 }
 0x1bc   : > { %1839 = vmatmul.mubr.bf16.gmra.mrb[60].mxu1 %v2601_v18 }
 0x217   : > { %v2294_v60 = vpop.f32.mrb[0].mxu1 }
 0x218   : > { %v2295_v42 = vpop.f32.mrb[1].mxu1 }
 0x219   : > { %v2296_v54 = vadd.f32 %v2295_v42, %v2294_v60  ;;  %v2297_v38 = vpop.f32.mrb[2].mxu1 }
 0x21a   : > { %v2298_v41 = vpop.f32.mrb[3].mxu1 }
 0x21b   : > { %v2299_v46 = vadd.f32 %v2298_v41, %v2297_v38 }
 0x21f   : > { %v2300_v30 = vpop.f32.mrb[4].mxu1 }
 0x220   : > { %v2301_v24 = vpop.f32.mrb[5].mxu1 }
 0x221   : > { %v2302_v20 = vadd.f32 %v2301_v24, %v2300_v30  ;;  %v2303_v5 = vpop.f32.mrb[6].mxu1  ;;  %v1927_v24 = vpop.permute.xlu0 %1926 }
 0x222   : > { %v2304_v6 = vpop.f32.mrb[7].mxu1 }
 0x223   : > { %v2305_v12 = vadd.f32 %v2304_v6, %v2303_v5 }
 0x227   : > { %v2306_v1 = vpop.f32.mrb[8].mxu1 }
 0x228   : > { %v2307_v35 = vpop.f32.mrb[9].mxu1 }
 0x229   : > { %v3314_v55 = vadd.f32 %v2307_v35, %v2306_v1  ;;  %v2309_v43 = vpop.f32.mrb[10].mxu1  ;;  %v1932_v1 = vpop.permute.xlu1 %1931 }
 0x22a   : > { %v2310_v26 = vpop.f32.mrb[11].mxu1 }
 0x22b   : > { %v3316_v27 = vadd.f32 %v2310_v26, %v2309_v43 }
 0x22f   : > { %v2312_v47 = vpop.f32.mrb[12].mxu1 }
 0x230   : > { %v2313_v63 = vpop.f32.mrb[13].mxu1 }
 0x231   : > { %v3318_v10 = vadd.f32 %v2313_v63, %v2312_v47  ;;  %v2315_v28 = vpop.f32.mrb[14].mxu1 }
 0x232   : > { %v2316_v44 = vpop.f32.mrb[15].mxu1 }
 0x233   : > { %v3320_v4 = vadd.f32 %v2316_v44, %v2315_v28 }
 0x237   : > { %v2318_v62 = vpop.f32.mrb[16].mxu1 }
 0x238   : > { %v2319_v56 = vpop.f32.mrb[17].mxu1 }
 0x239   : > { %v3322_v25 = vadd.f32 %v2319_v56, %v2318_v62  ;;  %v2321_v8 = vpop.f32.mrb[18].mxu1  ;;  %v1937_v56 = vpop.permute.xlu0 %1936 }
 0x23a   : > { %v2322_v9 = vpop.f32.mrb[19].mxu1 }
 0x23b   : > { %v3324_v49 = vadd.f32 %v2322_v9, %v2321_v8 }
 0x23f   : > { %v2324_v19 = vpop.f32.mrb[20].mxu1 }
 0x240   : > { %v2325_v59 = vpop.f32.mrb[21].mxu1 }
 0x241   : > { %v3326_v13 = vadd.f32 %v2325_v59, %v2324_v19  ;;  %v2327_v50 = vpop.f32.mrb[22].mxu1  ;;  %v1942_v19 = vpop.permute.xlu1 %1941 }
 0x242   : > { %v2328_v32 = vpop.f32.mrb[23].mxu1 }
 0x243   : > { %v3328_v37 = vadd.f32 %v2328_v32, %v2327_v50 }
 0x247   : > { %v2330_v57 = vpop.f32.mrb[24].mxu1 }
 0x248   : > { %v2331_v16 = vpop.f32.mrb[25].mxu1 }
 0x249   : > { %v3330_v11 = vadd.f32 %v2331_v16, %v2330_v57  ;;  %v2333_v39 = vpop.f32.mrb[26].mxu1 }
 0x24a   : > { %v2334_v21 = vpop.f32.mrb[27].mxu1 }
 0x24b   : > { %v3332_v45 = vadd.f32 %v2334_v21, %v2333_v39 }
 0x24f   : > { %v2336_v52 = vpop.f32.mrb[28].mxu1 }
 0x250   : > { %v2337_v17 = vpop.f32.mrb[29].mxu1 }
 0x251   : > { %v3334_v48 = vadd.f32 %v2337_v17, %v2336_v52  ;;  %v2339_v29 = vpop.f32.mrb[30].mxu1  ;;  %v1947_v17 = vpop.permute.xlu0 %1946 }
 0x252   : > { %v2340_v0 = vpop.f32.mrb[31].mxu1 }
 0x253   : > { %v3336_v36 = vadd.f32 %v2340_v0, %v2339_v29 }
 0x257   : > { %v2358_v51 = vpop.f32.mrb[32].mxu1 }
 0x258   : > { %v2359_v33 = vpop.f32.mrb[33].mxu1 }
 0x259   : > { %v2360_v34 = vadd.f32 %v2359_v33, %v2358_v51  ;;  %v2361_v2 = vpop.f32.mrb[34].mxu1  ;;  %v1952_v51 = vpop.permute.xlu1 %1951 }
 0x25a   : > { %v2362_v40 = vpop.f32.mrb[35].mxu1 }
 0x25b   : > { %v1785_v53 = vadd.f32 %v2360_v34, %v2296_v54  ;;  %v2363_v31 = vadd.f32 %v2362_v40, %v2361_v2 }
 0x25d   : > { %v1788_v14 = vadd.f32 %v2363_v31, %v2299_v46  ;;  %v1994_v58 = vmul.f32 %v1917_v15, %v1785_v53 }
 0x25f   : > { %v2364_v3 = vpop.f32.mrb[36].mxu1  ;;  %v2017_v23 = vadd.f32 %v3341_v61, %v1994_v58  ;;  %v1995_v18 = vmul.f32 %v1922_v22, %v1788_v14  ;;  %v1957_v58 = vpop.permute.xlu0 %1956 }
 0x260   : > { %v2365_v7 = vpop.f32.mrb[37].mxu1 }
 0x261   : > { %v2366_v60 = vadd.f32 %v2365_v7, %v2364_v3  ;;  %v2367_v42 = vpop.f32.mrb[38].mxu1  ;;  %2033 = vst [vmem:[%s3348_s30] sm:$0xff] %v2017_v23  ;;  %v2018_v38 = vadd.f32 %v3341_v61, %v1995_v18  ;;  %v1962_v7 = vpop.permute.xlu1 %1961 }
 0x262   : > { %v2368_v54 = vpop.f32.mrb[39].mxu1 }
 0x263   : > { %v1793_v41 = vadd.f32 %v2366_v60, %v2302_v20  ;;  %v2369_v46 = vadd.f32 %v2368_v54, %v2367_v42  ;;  %2034 = vst [vmem:[%s3348_s30 + $0x8] sm:$0xff] %v2018_v38 }
 0x265   : > { %v1796_v30 = vadd.f32 %v2369_v46, %v2305_v12  ;;  %v1996_v5 = vmul.f32 %v1927_v24, %v1793_v41 }
 0x267   : > { %v2370_v6 = vpop.f32.mrb[40].mxu1  ;;  %v2019_v43 = vadd.f32 %v3341_v61, %v1996_v5  ;;  %v1997_v26 = vmul.f32 %v1932_v1, %v1796_v30  ;;  %v1967_v30 = vpop.permute.xlu0 %1966 }
 0x268   : > { %v2371_v35 = vpop.f32.mrb[41].mxu1 }
 0x269   : > { %v2372_v47 = vadd.f32 %v2371_v35, %v2370_v6  ;;  %v2373_v63 = vpop.f32.mrb[42].mxu1  ;;  %2035 = vst [vmem:[%s3348_s30 + $0x10] sm:$0xff] %v2019_v43  ;;  %v2020_v44 = vadd.f32 %v3341_v61, %v1997_v26  ;;  %v1972_v6 = vpop.permute.xlu1 %1971 }
 0x26a   : > { %v2374_v28 = vpop.f32.mrb[43].mxu1 }
 0x26b   : > { %v1801_v20 = vadd.f32 %v2372_v47, %v3314_v55  ;;  %v2375_v62 = vadd.f32 %v2374_v28, %v2373_v63  ;;  %2036 = vst [vmem:[%s3348_s30 + $0x18] sm:$0xff] %v2020_v44 }
 0x26d   : > { %v1804_v12 = vadd.f32 %v2375_v62, %v3316_v27  ;;  %v1998_v8 = vmul.f32 %v1937_v56, %v1801_v20  ;;  %v1977_v20 = vpop.permute.xlu0 %1976  ;;  %v1982_v56 = vpop.permute.xlu1 %1981 }
 0x26f   : > { %v2376_v9 = vpop.f32.mrb[44].mxu1  ;;  %v2021_v50 = vadd.f32 %v3341_v61, %v1998_v8  ;;  %v1999_v32 = vmul.f32 %v1942_v19, %v1804_v12 }
 0x270   : > { %v2377_v59 = vpop.f32.mrb[45].mxu1 }
 0x271   : > { %v2378_v57 = vadd.f32 %v2377_v59, %v2376_v9  ;;  %v2379_v16 = vpop.f32.mrb[46].mxu1  ;;  %2037 = vst [vmem:[%s3348_s30 + $0x20] sm:$0xff] %v2021_v50  ;;  %v2022_v55 = vadd.f32 %v3341_v61, %v1999_v32 }
 0x272   : > { %v2380_v39 = vpop.f32.mrb[47].mxu1 }
 0x273   : > { %v1809_v21 = vadd.f32 %v2378_v57, %v3318_v10  ;;  %v2381_v52 = vadd.f32 %v2380_v39, %v2379_v16  ;;  %2038 = vst [vmem:[%s3348_s30 + $0x28] sm:$0xff] %v2022_v55  ;;  %v1987_v39 = vpop.permute.xlu0 %1986 }
 0x275   : > { %v1812_v27 = vadd.f32 %v2381_v52, %v3320_v4  ;;  %v2000_v29 = vmul.f32 %v1947_v17, %v1809_v21  ;;  %v1992_v21 = vpop.permute.xlu1 %1991 }
 0x277   : > { %v2382_v0 = vpop.f32.mrb[48].mxu1  ;;  %v2023_v34 = vadd.f32 %v3341_v61, %v2000_v29  ;;  %v2001_v2 = vmul.f32 %v1952_v51, %v1812_v27 }
 0x278   : > { %v2383_v33 = vpop.f32.mrb[49].mxu1 }
 0x279   : > { %v2384_v40 = vadd.f32 %v2383_v33, %v2382_v0  ;;  %v2385_v53 = vpop.f32.mrb[50].mxu1  ;;  %2039 = vst [vmem:[%s3348_s30 + $0x30] sm:$0xff] %v2023_v34  ;;  %v2024_v10 = vadd.f32 %v3341_v61, %v2001_v2 }
 0x27a   : > { %v2386_v31 = vpop.f32.mrb[51].mxu1 }
 0x27b   : > { %v1817_v14 = vadd.f32 %v2384_v40, %v3322_v25  ;;  %v2387_v15 = vadd.f32 %v2386_v31, %v2385_v53  ;;  %2040 = vst [vmem:[%s3348_s30 + $0x38] sm:$0xff] %v2024_v10 }
 0x27d   : > { %v1820_v4 = vadd.f32 %v2387_v15, %v3324_v49  ;;  %v2002_v3 = vmul.f32 %v1957_v58, %v1817_v14 }
 0x27f   : > { %v2388_v22 = vpop.f32.mrb[52].mxu1  ;;  %v2025_v18 = vadd.f32 %v3341_v61, %v2002_v3  ;;  %v2003_v60 = vmul.f32 %v1962_v7, %v1820_v4 }
 0x280   : > { %v2389_v23 = vpop.f32.mrb[53].mxu1 }
 0x281   : > { %v2390_v42 = vadd.f32 %v2389_v23, %v2388_v22  ;;  %v2391_v54 = vpop.f32.mrb[54].mxu1  ;;  %2041 = vst [vmem:[%s3348_s30 + $0x40] sm:$0xff] %v2025_v18  ;;  %v2026_v25 = vadd.f32 %v3341_v61, %v2003_v60 }
 0x282   : > { %v2392_v38 = vpop.f32.mrb[55].mxu1 }
 0x283   : > { %v1825_v41 = vadd.f32 %v2390_v42, %v3326_v13  ;;  %v2393_v46 = vadd.f32 %v2392_v38, %v2391_v54  ;;  %2042 = vst [vmem:[%s3348_s30 + $0x48] sm:$0xff] %v2026_v25 }
 0x285   : > { %v1828_v49 = vadd.f32 %v2393_v46, %v3328_v37  ;;  %v2004_v24 = vmul.f32 %v1967_v30, %v1825_v41 }
 0x287   : > { %v2394_v5 = vpop.f32.mrb[56].mxu1  ;;  %v2027_v35 = vadd.f32 %v3341_v61, %v2004_v24  ;;  %v2005_v43 = vmul.f32 %v1972_v6, %v1828_v49 }
 0x288   : > { %v2395_v1 = vpop.f32.mrb[57].mxu1 }
 0x289   : > { %v2396_v26 = vadd.f32 %v2395_v1, %v2394_v5  ;;  %v2397_v47 = vpop.f32.mrb[58].mxu1  ;;  %2043 = vst [vmem:[%s3348_s30 + $0x50] sm:$0xff] %v2027_v35  ;;  %v2028_v13 = vadd.f32 %v3341_v61, %v2005_v43 }
 0x28a   : > { %v2398_v63 = vpop.f32.mrb[59].mxu1 }
 0x28b   : > { %v1833_v28 = vadd.f32 %v2396_v26, %v3330_v11  ;;  %v2399_v44 = vadd.f32 %v2398_v63, %v2397_v47  ;;  %2044 = vst [vmem:[%s3348_s30 + $0x58] sm:$0xff] %v2028_v13 }
 0x28d   : > { %v1836_v37 = vadd.f32 %v2399_v44, %v3332_v45  ;;  %v2006_v62 = vmul.f32 %v1977_v20, %v1833_v28 }
 0x28f   : > { %v2400_v12 = vpop.f32.mrb[60].mxu1  ;;  %v2029_v9 = vadd.f32 %v3341_v61, %v2006_v62  ;;  %v2007_v19 = vmul.f32 %v1982_v56, %v1836_v37 }
 0x290   : > { %v2401_v8 = vpop.f32.mrb[61].mxu1 }
 0x291   : > { %v2402_v59 = vadd.f32 %v2401_v8, %v2400_v12  ;;  %v2403_v50 = vpop.f32.mrb[62].mxu1  ;;  %2045 = vst [vmem:[%s3348_s30 + $0x60] sm:$0xff] %v2029_v9  ;;  %v2030_v11 = vadd.f32 %v3341_v61, %v2007_v19 }
 0x292   : > { %v2404_v32 = vpop.f32.mrb[63].mxu1 }
 0x293   : > { %v1841_v57 = vadd.f32 %v2402_v59, %v3334_v48  ;;  %v2405_v16 = vadd.f32 %v2404_v32, %v2403_v50  ;;  %2046 = vst [vmem:[%s3348_s30 + $0x68] sm:$0xff] %v2030_v11 }
 0x295   : > { %v1844_v45 = vadd.f32 %v2405_v16, %v3336_v36  ;;  %v2008_v55 = vmul.f32 %v1987_v39, %v1841_v57 }
 0x297   : > { %v2031_v52 = vadd.f32 %v3341_v61, %v2008_v55  ;;  %v2009_v27 = vmul.f32 %v1992_v21, %v1844_v45 }
 0x299   : > { %2047 = vst [vmem:[%s3348_s30 + $0x70] sm:$0xff] %v2031_v52  ;;  %v2032_v17 = vadd.f32 %v3341_v61, %v2009_v27 }
 0x29b   : > { %2048 = vst [vmem:[%s3348_s30 + $0x78] sm:$0xff] %v2032_v17 }
 0x29c PF: > { %s16_s23 = sadd.s32 1, %s2624_s23   ;;  %s3410_s21 = smov %s2620_s22 }
 0x29d   : > { %p13_p5 = scmp.ge.s32.totalorder %s16_s23, 6   ;;  %s3411_s22 = smov %s3413_s24 }
 0x29f   :  { %15 = sbr.rel (!%p13_p5) target bundleno = 2 (0x2), region = 89 }

</bundles_post_ra>
